<compile_context>
chip_gen: v5e
topology: v5e:2x2
jax: 0.10.0
libtpu: 0.0.40
codegen_flags: <defaults>
</compile_context>

<pallas_src>
import functools

import jax
import jax.numpy as jnp
import numpy as np
from jax import lax
from jax.experimental import pallas as pl
from jax.experimental.pallas import tpu as pltpu


def _round_up(x, m):
    return ((x + m - 1) // m) * m


def _fuse_conv_kernel(x_ref, w_ref, b_ref, o_ref, *, H, Wp, KH, KW):
    # x_ref: (H + KH - 1, Wp + KW - 1, C)  padded NHWC image (one batch element)
    # w_ref: (KH * KW, C, Op)              per-tap weight matrices
    # b_ref: (1, Op)                       lane-padded bias
    # o_ref: (H * Wp, Op)                  lane-dense NHWC output slab
    C = x_ref.shape[-1]
    Op = w_ref.shape[-1]
    acc = jnp.zeros((H * Wp, Op), jnp.float32)
    for kh in range(KH):
        for kw in range(KW):
            # Shifted window (static slice of the VMEM block); Wp % 8 == 0 makes
            # the (H, Wp, C) -> (H*Wp, C) collapse a layout no-op.
            patch = x_ref[kh:kh + H, kw:kw + Wp, :].reshape(H * Wp, C)
            acc = acc + jnp.dot(
                patch,
                w_ref[kh * KW + kw],
                preferred_element_type=jnp.float32,
            )
    o_ref[...] = (acc + b_ref[...]).astype(o_ref.dtype)


def fuse_conv_forward(x, w, b, *, stride=1, padding=1):
    """Forward pass of FuseConv.

    x: (B, C, H, W) float32   w: (O, C, KH, KW) float32   b: (O,) float32
    Returns (B, O, H, W) float32.
    """
    B, C, H, W = x.shape
    O, Cw, KH, KW = w.shape
    assert C == Cw
    # The module's final .view(B, O, H, W) requires a shape-preserving conv.
    assert stride == 1, "FuseConv's output view requires stride=1"
    assert (H + 2 * padding - KH) + 1 == H and (W + 2 * padding - KW) + 1 == W, (
        "FuseConv's output view requires shape-preserving conv params"
    )

    # ---- layout glue (plain JAX; no im2col materialization) ----
    Wp = _round_up(W, 8)          # sublane-aligned row width
    Op = _round_up(O, 128)        # lane-dense out-channel width
    Hp = H + KH - 1               # padded image height
    Wpe = Wp + KW - 1             # padded (and right-extended) image width

    x_nhwc = jnp.transpose(x, (0, 2, 3, 1))                        # (B, H, W, C)
    xp = jnp.pad(
        x_nhwc,
        ((0, 0), (padding, padding), (padding, Wpe - W - padding), (0, 0)),
    )                                                              # (B, Hp, Wpe, C)

    # (O, C, KH, KW) -> (KH*KW, C, Op), zero-padded on the out-channel lanes.
    w_mat = jnp.transpose(w, (2, 3, 1, 0)).reshape(KH * KW, C, O)
    w_mat = jnp.pad(w_mat, ((0, 0), (0, 0), (0, Op - O)))
    b_mat = jnp.pad(b, (0, Op - O)).reshape(1, Op)

    kernel = functools.partial(_fuse_conv_kernel, H=H, Wp=Wp, KH=KH, KW=KW)

    flops = 2 * B * (H * Wp) * C * KH * KW * Op
    bytes_accessed = 4 * (xp.size + w_mat.size + b_mat.size + B * H * Wp * Op)

    out = pl.pallas_call(
        kernel,
        out_shape=jax.ShapeDtypeStruct((B, H * Wp, Op), jnp.float32),
        grid_spec=pltpu.PrefetchScalarGridSpec(
            num_scalar_prefetch=0,
            grid=(B,),
            in_specs=[
                pl.BlockSpec((None, Hp, Wpe, C), lambda bi: (bi, 0, 0, 0)),
                pl.BlockSpec((KH * KW, C, Op), lambda bi: (0, 0, 0)),
                pl.BlockSpec((1, Op), lambda bi: (0, 0)),
            ],
            out_specs=pl.BlockSpec((None, H * Wp, Op), lambda bi: (bi, 0, 0)),
        ),
        compiler_params=pltpu.CompilerParams(
            dimension_semantics=("parallel",),
        ),
        cost_estimate=pl.CostEstimate(
            flops=flops, transcendentals=0, bytes_accessed=bytes_accessed
        ),
    )(xp, w_mat, b_mat)

    # (B, H*Wp, Op) -> slice off lane/width padding (before transposing) -> NCHW.
    y = out.reshape(B, H, Wp, Op)[:, :, :W, :O]
    return jnp.transpose(y, (0, 3, 1, 2))


def _reference_conv(x, w, b, *, stride=1, padding=1):
    out = lax.conv_general_dilated(
        x,
        w,
        window_strides=(stride, stride),
        padding=((padding, padding), (padding, padding)),
        dimension_numbers=("NCHW", "OIHW", "NCHW"),
        precision=lax.Precision.HIGHEST,
    )
    return out + b.reshape(1, -1, 1, 1)


if __name__ == "__main__":
    # Small deterministic example consistent with FuseConv(in=4, out=8, k=3, pad=1).
    B, C, H, W = 2, 4, 16, 16
    O, K = 8, 3
    pad = K // 2

    key = jax.random.PRNGKey(0)
    kx, kwt, kb = jax.random.split(key, 3)
    x = jax.random.normal(kx, (B, C, H, W), dtype=jnp.float32)
    w = jax.random.normal(kwt, (O, C, K, K), dtype=jnp.float32) * 0.1
    b = jax.random.normal(kb, (O,), dtype=jnp.float32) * 0.1

    fwd = jax.jit(functools.partial(fuse_conv_forward, stride=1, padding=pad))
    y = fwd(x, w, b)
    jax.block_until_ready(y)

    y_ref = _reference_conv(x, w, b, stride=1, padding=pad)
    # Kernel uses the fast single-pass bf16 MXU path (default precision);
    # compare against an f32 (HIGHEST) reference at bf16-level tolerance.
    np.testing.assert_allclose(np.asarray(y), np.asarray(y_ref), rtol=2e-2, atol=2e-2)

    print("KERNEL_OK")
</pallas_src>

<mosaic_0001>
module attributes {stable_mosaic.version = 11 : i64} {
  func.func @_fuse_conv_kernel(%arg0: i32, %arg1: memref<1x18x18x4xf32, #tpu.memory_space<vmem>>, %arg2: memref<9x4x128xf32, #tpu.memory_space<vmem>>, %arg3: memref<1x128xf32, #tpu.memory_space<vmem>>, %arg4: memref<1x256x128xf32, #tpu.memory_space<vmem>>) attributes {dimension_semantics = [#tpu.dimension_semantics<parallel>], iteration_bounds = array<i64: 2>, scalar_prefetch = 0 : i64, scratch_operands = 0 : i64, tpu.core_type = #tpu.core_type<tc>, window_params = [{transform_indices = @transform_0, window_bounds = array<i64: 1, 18, 18, 4>}, {pipeline_mode = #tpu.pipeline_mode<synchronous>, transform_indices = @transform_1, window_bounds = array<i64: 9, 4, 128>}, {pipeline_mode = #tpu.pipeline_mode<synchronous>, transform_indices = @transform_2, window_bounds = array<i64: 1, 128>}, {transform_indices = @transform_3, window_bounds = array<i64: 1, 256, 128>}]} {
    %cst = arith.constant 0.000000e+00 : f32
    %0 = vector.broadcast %cst : f32 to vector<256x128xf32>
    %c0 = arith.constant 0 : index
    %c0_0 = arith.constant 0 : index
    %c0_1 = arith.constant 0 : index
    %c0_2 = arith.constant 0 : index
    %1 = vector.load %arg1[%c0, %c0_0, %c0_1, %c0_2] : memref<1x18x18x4xf32, #tpu.memory_space<vmem>>, vector<1x16x16x4xf32>
    %2 = vector.shape_cast %1 : vector<1x16x16x4xf32> to vector<16x16x4xf32>
    %3 = vector.shape_cast %2 : vector<16x16x4xf32> to vector<256x4xf32>
    %c0_3 = arith.constant 0 : index
    %c0_4 = arith.constant 0 : index
    %c0_5 = arith.constant 0 : index
    %4 = vector.load %arg2[%c0_3, %c0_4, %c0_5] : memref<9x4x128xf32, #tpu.memory_space<vmem>>, vector<1x4x128xf32>
    %5 = vector.shape_cast %4 : vector<1x4x128xf32> to vector<4x128xf32>
    %cst_6 = arith.constant dense<0.000000e+00> : vector<256x128xf32>
    %6 = tpu.matmul %3, %5, %cst_6 {dimension_numbers = #tpu.dot_dimension_numbers<[1], [0], [0], [1], [0, 0, 1, 1], [], []>} : vector<256x4xf32>, vector<4x128xf32>, vector<256x128xf32> -> vector<256x128xf32>
    %7 = arith.addf %0, %6 : vector<256x128xf32>
    %c0_7 = arith.constant 0 : index
    %c0_8 = arith.constant 0 : index
    %c1 = arith.constant 1 : index
    %c0_9 = arith.constant 0 : index
    %8 = vector.load %arg1[%c0_7, %c0_8, %c1, %c0_9] : memref<1x18x18x4xf32, #tpu.memory_space<vmem>>, vector<1x16x16x4xf32>
    %9 = vector.shape_cast %8 : vector<1x16x16x4xf32> to vector<16x16x4xf32>
    %10 = vector.shape_cast %9 : vector<16x16x4xf32> to vector<256x4xf32>
    %c1_10 = arith.constant 1 : index
    %c0_11 = arith.constant 0 : index
    %c0_12 = arith.constant 0 : index
    %11 = vector.load %arg2[%c1_10, %c0_11, %c0_12] : memref<9x4x128xf32, #tpu.memory_space<vmem>>, vector<1x4x128xf32>
    %12 = vector.shape_cast %11 : vector<1x4x128xf32> to vector<4x128xf32>
    %cst_13 = arith.constant dense<0.000000e+00> : vector<256x128xf32>
    %13 = tpu.matmul %10, %12, %cst_13 {dimension_numbers = #tpu.dot_dimension_numbers<[1], [0], [0], [1], [0, 0, 1, 1], [], []>} : vector<256x4xf32>, vector<4x128xf32>, vector<256x128xf32> -> vector<256x128xf32>
    %14 = arith.addf %7, %13 : vector<256x128xf32>
    %c0_14 = arith.constant 0 : index
    %c0_15 = arith.constant 0 : index
    %c2 = arith.constant 2 : index
    %c0_16 = arith.constant 0 : index
    %15 = vector.load %arg1[%c0_14, %c0_15, %c2, %c0_16] : memref<1x18x18x4xf32, #tpu.memory_space<vmem>>, vector<1x16x16x4xf32>
    %16 = vector.shape_cast %15 : vector<1x16x16x4xf32> to vector<16x16x4xf32>
    %17 = vector.shape_cast %16 : vector<16x16x4xf32> to vector<256x4xf32>
    %c2_17 = arith.constant 2 : index
    %c0_18 = arith.constant 0 : index
    %c0_19 = arith.constant 0 : index
    %18 = vector.load %arg2[%c2_17, %c0_18, %c0_19] : memref<9x4x128xf32, #tpu.memory_space<vmem>>, vector<1x4x128xf32>
    %19 = vector.shape_cast %18 : vector<1x4x128xf32> to vector<4x128xf32>
    %cst_20 = arith.constant dense<0.000000e+00> : vector<256x128xf32>
    %20 = tpu.matmul %17, %19, %cst_20 {dimension_numbers = #tpu.dot_dimension_numbers<[1], [0], [0], [1], [0, 0, 1, 1], [], []>} : vector<256x4xf32>, vector<4x128xf32>, vector<256x128xf32> -> vector<256x128xf32>
    %21 = arith.addf %14, %20 : vector<256x128xf32>
    %c0_21 = arith.constant 0 : index
    %c1_22 = arith.constant 1 : index
    %c0_23 = arith.constant 0 : index
    %c0_24 = arith.constant 0 : index
    %22 = vector.load %arg1[%c0_21, %c1_22, %c0_23, %c0_24] : memref<1x18x18x4xf32, #tpu.memory_space<vmem>>, vector<1x16x16x4xf32>
    %23 = vector.shape_cast %22 : vector<1x16x16x4xf32> to vector<16x16x4xf32>
    %24 = vector.shape_cast %23 : vector<16x16x4xf32> to vector<256x4xf32>
    %c3 = arith.constant 3 : index
    %c0_25 = arith.constant 0 : index
    %c0_26 = arith.constant 0 : index
    %25 = vector.load %arg2[%c3, %c0_25, %c0_26] : memref<9x4x128xf32, #tpu.memory_space<vmem>>, vector<1x4x128xf32>
    %26 = vector.shape_cast %25 : vector<1x4x128xf32> to vector<4x128xf32>
    %cst_27 = arith.constant dense<0.000000e+00> : vector<256x128xf32>
    %27 = tpu.matmul %24, %26, %cst_27 {dimension_numbers = #tpu.dot_dimension_numbers<[1], [0], [0], [1], [0, 0, 1, 1], [], []>} : vector<256x4xf32>, vector<4x128xf32>, vector<256x128xf32> -> vector<256x128xf32>
    %28 = arith.addf %21, %27 : vector<256x128xf32>
    %c0_28 = arith.constant 0 : index
    %c1_29 = arith.constant 1 : index
    %c1_30 = arith.constant 1 : index
    %c0_31 = arith.constant 0 : index
    %29 = vector.load %arg1[%c0_28, %c1_29, %c1_30, %c0_31] : memref<1x18x18x4xf32, #tpu.memory_space<vmem>>, vector<1x16x16x4xf32>
    %30 = vector.shape_cast %29 : vector<1x16x16x4xf32> to vector<16x16x4xf32>
    %31 = vector.shape_cast %30 : vector<16x16x4xf32> to vector<256x4xf32>
    %c4 = arith.constant 4 : index
    %c0_32 = arith.constant 0 : index
    %c0_33 = arith.constant 0 : index
    %32 = vector.load %arg2[%c4, %c0_32, %c0_33] : memref<9x4x128xf32, #tpu.memory_space<vmem>>, vector<1x4x128xf32>
    %33 = vector.shape_cast %32 : vector<1x4x128xf32> to vector<4x128xf32>
    %cst_34 = arith.constant dense<0.000000e+00> : vector<256x128xf32>
    %34 = tpu.matmul %31, %33, %cst_34 {dimension_numbers = #tpu.dot_dimension_numbers<[1], [0], [0], [1], [0, 0, 1, 1], [], []>} : vector<256x4xf32>, vector<4x128xf32>, vector<256x128xf32> -> vector<256x128xf32>
    %35 = arith.addf %28, %34 : vector<256x128xf32>
    %c0_35 = arith.constant 0 : index
    %c1_36 = arith.constant 1 : index
    %c2_37 = arith.constant 2 : index
    %c0_38 = arith.constant 0 : index
    %36 = vector.load %arg1[%c0_35, %c1_36, %c2_37, %c0_38] : memref<1x18x18x4xf32, #tpu.memory_space<vmem>>, vector<1x16x16x4xf32>
    %37 = vector.shape_cast %36 : vector<1x16x16x4xf32> to vector<16x16x4xf32>
    %38 = vector.shape_cast %37 : vector<16x16x4xf32> to vector<256x4xf32>
    %c5 = arith.constant 5 : index
    %c0_39 = arith.constant 0 : index
    %c0_40 = arith.constant 0 : index
    %39 = vector.load %arg2[%c5, %c0_39, %c0_40] : memref<9x4x128xf32, #tpu.memory_space<vmem>>, vector<1x4x128xf32>
    %40 = vector.shape_cast %39 : vector<1x4x128xf32> to vector<4x128xf32>
    %cst_41 = arith.constant dense<0.000000e+00> : vector<256x128xf32>
    %41 = tpu.matmul %38, %40, %cst_41 {dimension_numbers = #tpu.dot_dimension_numbers<[1], [0], [0], [1], [0, 0, 1, 1], [], []>} : vector<256x4xf32>, vector<4x128xf32>, vector<256x128xf32> -> vector<256x128xf32>
    %42 = arith.addf %35, %41 : vector<256x128xf32>
    %c0_42 = arith.constant 0 : index
    %c2_43 = arith.constant 2 : index
    %c0_44 = arith.constant 0 : index
    %c0_45 = arith.constant 0 : index
    %43 = vector.load %arg1[%c0_42, %c2_43, %c0_44, %c0_45] : memref<1x18x18x4xf32, #tpu.memory_space<vmem>>, vector<1x16x16x4xf32>
    %44 = vector.shape_cast %43 : vector<1x16x16x4xf32> to vector<16x16x4xf32>
    %45 = vector.shape_cast %44 : vector<16x16x4xf32> to vector<256x4xf32>
    %c6 = arith.constant 6 : index
    %c0_46 = arith.constant 0 : index
    %c0_47 = arith.constant 0 : index
    %46 = vector.load %arg2[%c6, %c0_46, %c0_47] : memref<9x4x128xf32, #tpu.memory_space<vmem>>, vector<1x4x128xf32>
    %47 = vector.shape_cast %46 : vector<1x4x128xf32> to vector<4x128xf32>
    %cst_48 = arith.constant dense<0.000000e+00> : vector<256x128xf32>
    %48 = tpu.matmul %45, %47, %cst_48 {dimension_numbers = #tpu.dot_dimension_numbers<[1], [0], [0], [1], [0, 0, 1, 1], [], []>} : vector<256x4xf32>, vector<4x128xf32>, vector<256x128xf32> -> vector<256x128xf32>
    %49 = arith.addf %42, %48 : vector<256x128xf32>
    %c0_49 = arith.constant 0 : index
    %c2_50 = arith.constant 2 : index
    %c1_51 = arith.constant 1 : index
    %c0_52 = arith.constant 0 : index
    %50 = vector.load %arg1[%c0_49, %c2_50, %c1_51, %c0_52] : memref<1x18x18x4xf32, #tpu.memory_space<vmem>>, vector<1x16x16x4xf32>
    %51 = vector.shape_cast %50 : vector<1x16x16x4xf32> to vector<16x16x4xf32>
    %52 = vector.shape_cast %51 : vector<16x16x4xf32> to vector<256x4xf32>
    %c7 = arith.constant 7 : index
    %c0_53 = arith.constant 0 : index
    %c0_54 = arith.constant 0 : index
    %53 = vector.load %arg2[%c7, %c0_53, %c0_54] : memref<9x4x128xf32, #tpu.memory_space<vmem>>, vector<1x4x128xf32>
    %54 = vector.shape_cast %53 : vector<1x4x128xf32> to vector<4x128xf32>
    %cst_55 = arith.constant dense<0.000000e+00> : vector<256x128xf32>
    %55 = tpu.matmul %52, %54, %cst_55 {dimension_numbers = #tpu.dot_dimension_numbers<[1], [0], [0], [1], [0, 0, 1, 1], [], []>} : vector<256x4xf32>, vector<4x128xf32>, vector<256x128xf32> -> vector<256x128xf32>
    %56 = arith.addf %49, %55 : vector<256x128xf32>
    %c0_56 = arith.constant 0 : index
    %c2_57 = arith.constant 2 : index
    %c2_58 = arith.constant 2 : index
    %c0_59 = arith.constant 0 : index
    %57 = vector.load %arg1[%c0_56, %c2_57, %c2_58, %c0_59] : memref<1x18x18x4xf32, #tpu.memory_space<vmem>>, vector<1x16x16x4xf32>
    %58 = vector.shape_cast %57 : vector<1x16x16x4xf32> to vector<16x16x4xf32>
    %59 = vector.shape_cast %58 : vector<16x16x4xf32> to vector<256x4xf32>
    %c8 = arith.constant 8 : index
    %c0_60 = arith.constant 0 : index
    %c0_61 = arith.constant 0 : index
    %60 = vector.load %arg2[%c8, %c0_60, %c0_61] : memref<9x4x128xf32, #tpu.memory_space<vmem>>, vector<1x4x128xf32>
    %61 = vector.shape_cast %60 : vector<1x4x128xf32> to vector<4x128xf32>
    %cst_62 = arith.constant dense<0.000000e+00> : vector<256x128xf32>
    %62 = tpu.matmul %59, %61, %cst_62 {dimension_numbers = #tpu.dot_dimension_numbers<[1], [0], [0], [1], [0, 0, 1, 1], [], []>} : vector<256x4xf32>, vector<4x128xf32>, vector<256x128xf32> -> vector<256x128xf32>
    %63 = arith.addf %56, %62 : vector<256x128xf32>
    %c0_63 = arith.constant 0 : index
    %c0_64 = arith.constant 0 : index
    %64 = vector.load %arg3[%c0_63, %c0_64] : memref<1x128xf32, #tpu.memory_space<vmem>>, vector<1x128xf32>
    %65 = vector.broadcast %64 : vector<1x128xf32> to vector<256x128xf32>
    %66 = arith.addf %63, %65 : vector<256x128xf32>
    %c0_65 = arith.constant 0 : index
    %c0_66 = arith.constant 0 : index
    %c0_67 = arith.constant 0 : index
    %67 = vector.load %arg4[%c0_65, %c0_66, %c0_67] : memref<1x256x128xf32, #tpu.memory_space<vmem>>, vector<1x256x128xf32>
    %68 = vector.shape_cast %67 : vector<1x256x128xf32> to vector<256x128xf32>
    %69 = vector.shape_cast %66 : vector<256x128xf32> to vector<1x256x128xf32>
    tpu.vector_store %arg4[%c0_65, %c0_66, %c0_67], %69 {strides = array<i32>} : memref<1x256x128xf32, #tpu.memory_space<vmem>>, vector<1x256x128xf32>,
    return
  }
  func.func @transform_0(%arg0: i32) -> (i32, i32, i32, i32) {
    %c0_i32 = arith.constant 0 : i32
    %c0_i32_0 = arith.constant 0 : i32
    %c0_i32_1 = arith.constant 0 : i32
    %c0_i32_2 = arith.constant 0 : i32
    return %arg0, %c0_i32, %c0_i32_0, %c0_i32_1 : i32, i32, i32, i32
  }
  func.func @transform_1(%arg0: i32) -> (i32, i32, i32) {
    %c0_i32 = arith.constant 0 : i32
    %c0_i32_0 = arith.constant 0 : i32
    %c0_i32_1 = arith.constant 0 : i32
    %c0_i32_2 = arith.constant 0 : i32
    return %c0_i32, %c0_i32_0, %c0_i32_1 : i32, i32, i32
  }
  func.func @transform_2(%arg0: i32) -> (i32, i32) {
    %c0_i32 = arith.constant 0 : i32
    %c0_i32_0 = arith.constant 0 : i32
    %c0_i32_1 = arith.constant 0 : i32
    return %c0_i32, %c0_i32_0 : i32, i32
  }
  func.func @transform_3(%arg0: i32) -> (i32, i32, i32) {
    %c0_i32 = arith.constant 0 : i32
    %c0_i32_0 = arith.constant 0 : i32
    %c0_i32_1 = arith.constant 0 : i32
    return %arg0, %c0_i32, %c0_i32_0 : i32, i32, i32
  }
}

</mosaic_0001>

<bundles_post_ra>
// kernel: fuse_conv_forward.1
= control target key start
LH: loop header
LB: loop body
LE: loop exit
PB: predicated region body
PF: predicated region fallthrough
CT: control target
= control target key end

     0   :  { %s3284_s12 = smov 0   ;;  %s4449_s0 = inlined_call_operand.vmem [shape: f32[2,18,18,4], index: 0, kind: input, shape index: {}]   ;;  %s4450_s1 = inlined_call_operand.vmem [shape: f32[9,4,128], index: 1, kind: input, shape index: {}]   ;;  %s4451_s2 = inlined_call_operand.vmem [shape: f32[1,128], index: 2, kind: input, shape index: {}]   ;;  %s4452_s3 = inlined_call_operand.vmem [shape: f32[2,256,128], index: 3, kind: output, shape index: {}]  }
   0x1 LB: > { %s2735_s13 = sadd.s32 4294967295, %s3262_s12   ;;  %p2739_p0 = scmp.ge.s32.totalorder %s3262_s12, 1  ;;  %s3262_s12 = sphi %s3284_s12, %s13_s12  }
   0x2   : > { %p137_p1 = scmp.lt.s32.totalorder %s3262_s12, 3 }
   0x4   : > { %p138_p2 = pnand %p2739_p0, %p137_p1 }
   0x6   : > { %141 = sbr.rel (%p138_p2) target bundleno = 728 (0x2d8), region = 32 }
   0xb   : > { %v2743_v0 = vld [vmem:[%s4450_s1 + $0x4] sm:$0xf]  ;;  %vm335_vm0 = vcmask 1043456   ;;  %p161_p3 = scmp.lt.s32.totalorder %s2735_s13, 1  ;;  %v2810_v1 = vld [vmem:[%s4450_s1 + $0x8] sm:$0xf] }
   0xc   : > { %3243 = vmatpush.msk.msra.mxu1 %vm335_vm0, %v2743_v0  ;;  %3244 = vmatpush.msk.msra.mxu2 %vm335_vm0, %v2743_v0  ;;  %v2876_v2 = vld [vmem:[%s4450_s1 + $0xc] sm:$0xf]  ;;  %v203_v3 = vld [vmem:[%s4450_s1] sm:$0xf]  ;;  %v2942_v4 = vld [vmem:[%s4450_s1 + $0x10] sm:$0xf] }
   0xd   : > { %s4570_s13 = smov (!%p161_p3, %s2735_s13), 1  ;;  %3245 = vmatpush.msk.msra.mxu3 %vm335_vm0, %v2743_v0  ;;  %2744 = vmatpush.msk.msra.mxu0 %vm335_vm0, %v2743_v0  ;;  %vm238_vm1 = vcmask 31744   ;;  %v3074_v25 = vld [vmem:[%s4450_s1 + $0x18] sm:$0xf]  ;;  %v3140_v26 = vld [vmem:[%s4450_s1 + $0x1c] sm:$0xf] }
   0xe   : > { %2811 = vmatpush.msk.msrb.mxu2 %vm335_vm0, %v2810_v1  ;;  %2777 = vmatpush.msk.msrb.mxu1 %vm335_vm0, %v203_v3  ;;  %s3246_s24 = smul.u32 432, %s4570_s13  ;;  %v3008_v27 = vld [vmem:[%s4450_s1 + $0x14] sm:$0xf]  ;;  %v3206_v32 = vld [vmem:[%s4450_s1 + $0x20] sm:$0xf]  ;;  %s3242_s9 = sshll.u32 %s4570_s13, 8 }
   0xf   : > { %2877 = vmatpush.msk.msrb.mxu3 %vm335_vm0, %v2876_v2  ;;  %2943 = vmatpush.msk.msrb.mxu0 %vm335_vm0, %v2942_v4  ;;  %s4236_s16 = scalar_lea.vmem %s4452_s3, %s3242_s9 }
  0x10   : > { %s3321_s27 = scalar_lea.vmem %s4449_s0, %s3246_s24 }
  0x11   : > { %v3324_v5 = vld [vmem:[%s3321_s27 + $0x61] sm:$0xff]  ;;  %v3341_v9 = vld [vmem:[%s3321_s27 + $0x69] sm:$0xff]  ;;  %v3358_v13 = vld [vmem:[%s3321_s27 + $0x79] sm:$0xff] }
  0x12   : > { %v3327_v6 = vld [vmem:[%s3321_s27 + $0xc1] sm:$0xff]  ;;  %2753 = vmatmul.msk.f32.vlgmr.msra.gmra.mxu1 %vm238_vm1, %v3324_v5  ;;  %v3344_v10 = vld [vmem:[%s3321_s27 + $0xc9] sm:$0xff]  ;;  %v3361_v14 = vld [vmem:[%s3321_s27 + $0xd9] sm:$0xff] }
  0x13   : > { %v3330_v7 = vld [vmem:[%s3321_s27 + $0x121] sm:$0xff]  ;;  %2761 = vmatmul.msk.f32.vlgmr.msra.gmra.mxu2 %vm238_vm1, %v3327_v6  ;;  %v3347_v11 = vld [vmem:[%s3321_s27 + $0x129] sm:$0xff]  ;;  %v3364_v15 = vld [vmem:[%s3321_s27 + $0x139] sm:$0xff]  ;;  %3009 = vmatpush.msk.msra.mxu1 %vm335_vm0, %v3008_v27 }
  0x14   : > { %v204_v8 = vld [vmem:[%s3321_s27 + $0x1] sm:$0xff]  ;;  %2769 = vmatmul.msk.f32.vlgmr.msra.gmra.mxu3 %vm238_vm1, %v3330_v7  ;;  %v205_v12 = vld [vmem:[%s3321_s27 + $0x9] sm:$0xff]  ;;  %v206_v16 = vld [vmem:[%s3321_s27 + $0x19] sm:$0xff]  ;;  %3075 = vmatpush.msk.msra.mxu2 %vm335_vm0, %v3074_v25 }
  0x15   : > { %2745 = vmatmul.msk.f32.vlgmr.msra.gmra.mxu0 %vm238_vm1, %v204_v8  ;;  %v3375_v17 = vld [vmem:[%s3321_s27 + $0x81] sm:$0xff]  ;;  %v3392_v21 = vld [vmem:[%s3321_s27 + $0x91] sm:$0xff]  ;;  %3141 = vmatpush.msk.msra.mxu3 %vm335_vm0, %v3140_v26  ;;  %v3424_v28 = vld [vmem:[%s3321_s27 + $0x99] sm:$0xff] }
  0x16   : > { %v3378_v18 = vld [vmem:[%s3321_s27 + $0xe1] sm:$0xff]  ;;  %v3395_v22 = vld [vmem:[%s3321_s27 + $0xf1] sm:$0xff]  ;;  %v3427_v29 = vld [vmem:[%s3321_s27 + $0xf9] sm:$0xff]  ;;  %3207 = vmatpush.msk.msra.mxu0 %vm335_vm0, %v3206_v32 }
  0x17   : > { %v3381_v19 = vld [vmem:[%s3321_s27 + $0x141] sm:$0xff]  ;;  %v3398_v23 = vld [vmem:[%s3321_s27 + $0x151] sm:$0xff]  ;;  %v3430_v30 = vld [vmem:[%s3321_s27 + $0x159] sm:$0xff] }
  0x18   : > { %v207_v20 = vld [vmem:[%s3321_s27 + $0x21] sm:$0xff]  ;;  %v3401_v24 = vld [vmem:[%s3321_s27 + $0x31] sm:$0xff]  ;;  %v3433_v31 = vld [vmem:[%s3321_s27 + $0x39] sm:$0xff] }
  0x19   : > { %v3448_v33 = vld [vmem:[%s3321_s27 + $0xa9] sm:$0xff]  ;;  %v3468_v37 = vld [vmem:[%s3321_s27 + $0xb1] sm:$0xff]  ;;  %v171_v41 = vld [vmem:[%s3321_s27] sm:$0xff] }
  0x1a   : > { %2754 = vmatmul.msk.f32.gmra.mxu1 %vm238_vm1, %v3341_v9  ;;  %v3451_v34 = vld [vmem:[%s3321_s27 + $0x109] sm:$0xff]  ;;  %v3471_v38 = vld [vmem:[%s3321_s27 + $0x111] sm:$0xff]  ;;  %v2845_v46 = vld [vmem:[%s3321_s27 + $0x20] sm:$0xff] }
  0x1b   : > { %2762 = vmatmul.msk.f32.gmra.mxu2 %vm238_vm1, %v3344_v10  ;;  %v3454_v35 = vld [vmem:[%s3321_s27 + $0x169] sm:$0xff]  ;;  %v3474_v39 = vld [vmem:[%s3321_s27 + $0x171] sm:$0xff]  ;;  %v3502_v47 = vld [vmem:[%s3321_s27 + $0x1a] sm:$0xff] }
  0x1c   : > { %2770 = vmatmul.msk.f32.gmra.mxu3 %vm238_vm1, %v3347_v11  ;;  %v3457_v36 = vld [vmem:[%s3321_s27 + $0x49] sm:$0xff]  ;;  %v3477_v40 = vld [vmem:[%s3321_s27 + $0x51] sm:$0xff]  ;;  %v3542_v53 = vld [vmem:[%s3321_s27 + $0x3a] sm:$0xff] }
  0x1d   : > { %2746 = vmatmul.msk.f32.gmra.mxu0 %vm238_vm1, %v205_v12  ;;  %v664_v42 = vld [vmem:[%s3321_s27 + $0x2] sm:$0xff]  ;;  %v2844_v43 = vld [vmem:[%s3321_s27 + $0x18] sm:$0xff]  ;;  %v665_v45 = vld [vmem:[%s3321_s27 + $0xa] sm:$0xff] }
  0x1e   : > { %v172_v44 = vld [vmem:[%s3321_s27 + $0x8] sm:$0xff]  ;;  %v3505_v48 = vld [vmem:[%s3321_s27 + $0x30] sm:$0xff]  ;;  %v3518_v50 = vld [vmem:[%s3321_s27 + $0x38] sm:$0xff] }
  0x1f   : > { %v3515_v49 = vld [vmem:[%s3321_s27 + $0x22] sm:$0xff]  ;;  %v3528_v51 = vld [vmem:[%s3321_s27 + $0x32] sm:$0xff]  ;;  %v3556_v55 = vld [vmem:[%s3321_s27 + $0x4a] sm:$0xff] }
  0x20   : > { %v3531_v52 = vld [vmem:[%s3321_s27 + $0x48] sm:$0xff]  ;;  %v3545_v54 = vld [vmem:[%s3321_s27 + $0x50] sm:$0xff]  ;;  %v3559_v56 = vld [vmem:[%s3321_s27 + $0x60] sm:$0xff] }
  0x21   : > { %v3570_v57 = vld [vmem:[%s3321_s27 + $0x52] sm:$0xff]  ;;  %v3573_v58 = vld [vmem:[%s3321_s27 + $0x68] sm:$0xff]  ;;  %v3611_v3 = vld [vmem:[%s3321_s27 + $0x80] sm:$0xff] }
  0x22   : > { %2755 = vmatmul.msk.f32.gmra.mxu1 %vm238_vm1, %v3358_v13  ;;  %4481 = vst [vmem:[#allocation2_spill] sm:$0xff] %v3573_v58  ;;  %v3586_v60 = vld [vmem:[%s3321_s27 + $0x62] sm:$0xff]  ;;  %v3589_v61 = vld [vmem:[%s3321_s27 + $0x78] sm:$0xff]  ;;  %v3608_v2 = vld [vmem:[%s3321_s27 + $0x6a] sm:$0xff] }
  0x23   : > { %2763 = vmatmul.msk.f32.gmra.mxu2 %vm238_vm1, %v3361_v14  ;;  %4482 = vst [vmem:[#allocation3_spill] sm:$0xff] %v3589_v61  ;;  %v3630_v12 = vld [vmem:[%s3321_s27 + $0x7a] sm:$0xff]  ;;  %v3652_v26 = vld [vmem:[%s3321_s27 + $0x82] sm:$0xff] }
  0x24   : > { %2771 = vmatmul.msk.f32.gmra.mxu3 %vm238_vm1, %v3364_v15  ;;  %4484 = vst [vmem:[#allocation5_spill] sm:$0xff] %v3608_v2  ;;  %v3655_v27 = vld [vmem:[%s3321_s27 + $0x98] sm:$0xff] }
  0x25   : > { %2747 = vmatmul.msk.f32.gmra.mxu0 %vm238_vm1, %v206_v16  ;;  %4485 = vst [vmem:[#allocation6_spill] sm:$0xff] %v3611_v3 }
  0x26   : > { %4487 = vst [vmem:[#allocation8_spill] sm:$0xff] %v3630_v12 }
  0x27   : > { %4490 = vst [vmem:[#allocation11_spill] sm:$0xff] %v3652_v26 }
  0x28   : > { %4491 = vst [vmem:[#allocation12_spill] sm:$0xff] %v3655_v27 }
  0x2a   : > { %2756 = vmatmul.msk.f32.gmra.mxu1 %vm238_vm1, %v3375_v17 }
  0x2b   : > { %2764 = vmatmul.msk.f32.gmra.mxu2 %vm238_vm1, %v3378_v18 }
  0x2c   : > { %2772 = vmatmul.msk.f32.gmra.mxu3 %vm238_vm1, %v3381_v19 }
  0x2d   : > { %2748 = vmatmul.msk.f32.gmra.mxu0 %vm238_vm1, %v207_v20 }
  0x32   : > { %2757 = vmatmul.msk.f32.gmra.mxu1 %vm238_vm1, %v3392_v21 }
  0x33   : > { %2765 = vmatmul.msk.f32.gmra.mxu2 %vm238_vm1, %v3395_v22 }
  0x34   : > { %2773 = vmatmul.msk.f32.gmra.mxu3 %vm238_vm1, %v3398_v23 }
  0x35   : > { %2749 = vmatmul.msk.f32.gmra.mxu0 %vm238_vm1, %v3401_v24 }
  0x3a   : > { %2758 = vmatmul.msk.f32.gmra.mxu1 %vm238_vm1, %v3424_v28 }
  0x3b   : > { %2766 = vmatmul.msk.f32.gmra.mxu2 %vm238_vm1, %v3427_v29 }
  0x3c   : > { %2774 = vmatmul.msk.f32.gmra.mxu3 %vm238_vm1, %v3430_v30 }
  0x3d   : > { %2750 = vmatmul.msk.f32.gmra.mxu0 %vm238_vm1, %v3433_v31 }
  0x42   : > { %2759 = vmatmul.msk.f32.gmra.mxu1 %vm238_vm1, %v3448_v33 }
  0x43   : > { %2767 = vmatmul.msk.f32.gmra.mxu2 %vm238_vm1, %v3451_v34 }
  0x44   : > { %2775 = vmatmul.msk.f32.gmra.mxu3 %vm238_vm1, %v3454_v35 }
  0x45   : > { %2751 = vmatmul.msk.f32.gmra.mxu0 %vm238_vm1, %v3457_v36 }
  0x4a   : > { %2760 = vmatmul.msk.f32.gmra.mxu1 %vm238_vm1, %v3468_v37 }
  0x4b   : > { %2768 = vmatmul.msk.f32.gmra.mxu2 %vm238_vm1, %v3471_v38 }
  0x4c   : > { %2776 = vmatmul.msk.f32.gmra.mxu3 %vm238_vm1, %v3474_v39 }
  0x4d   : > { %2752 = vmatmul.msk.f32.gmra.mxu0 %vm238_vm1, %v3477_v40 }
  0x52   : > { %2778 = vmatmul.msk.f32.vlgmr.msrb.gmra.mxu1 %vm238_vm1, %v171_v41 }
  0x53   : > { %2812 = vmatmul.msk.f32.vlgmr.msrb.gmra.mxu2 %vm238_vm1, %v664_v42 }
  0x54   : > { %2878 = vmatmul.msk.f32.vlgmr.msrb.gmra.mxu3 %vm238_vm1, %v2844_v43 }
  0x55   : > { %2944 = vmatmul.msk.f32.vlgmr.msrb.gmra.mxu0 %vm238_vm1, %v206_v16 }
  0x5a   : > { %2779 = vmatmul.msk.f32.gmra.mxu1 %vm238_vm1, %v172_v44  ;;  %v3677_v44 = vld [vmem:[%s3321_s27 + $0xa8] sm:$0xff] }
  0x5b   : > { %2813 = vmatmul.msk.f32.gmra.mxu2 %vm238_vm1, %v665_v45  ;;  %4494 = vst [vmem:[#allocation15_spill] sm:$0xff] %v3677_v44 }
  0x5c   : > { %2879 = vmatmul.msk.f32.gmra.mxu3 %vm238_vm1, %v2845_v46 }
  0x5d   : > { %2945 = vmatmul.msk.f32.gmra.mxu0 %vm238_vm1, %v207_v20 }
  0x62   : > { %2780 = vmatmul.msk.f32.gmra.mxu1 %vm238_vm1, %v2844_v43  ;;  %v3674_v43 = vld [vmem:[%s3321_s27 + $0x92] sm:$0xff] }
  0x63   : > { %2814 = vmatmul.msk.f32.gmra.mxu2 %vm238_vm1, %v3502_v47  ;;  %4493 = vst [vmem:[#allocation14_spill] sm:$0xff] %v3674_v43 }
  0x64   : > { %2880 = vmatmul.msk.f32.gmra.mxu3 %vm238_vm1, %v3505_v48 }
  0x65   : > { %2946 = vmatmul.msk.f32.gmra.mxu0 %vm238_vm1, %v3401_v24 }
  0x6a   : > { %2781 = vmatmul.msk.f32.gmra.mxu1 %vm238_vm1, %v2845_v46 }
  0x6b   : > { %2815 = vmatmul.msk.f32.gmra.mxu2 %vm238_vm1, %v3515_v49 }
  0x6c   : > { %2881 = vmatmul.msk.f32.gmra.mxu3 %vm238_vm1, %v3518_v50 }
  0x6d   : > { %2947 = vmatmul.msk.f32.gmra.mxu0 %vm238_vm1, %v3433_v31 }
  0x72   : > { %2782 = vmatmul.msk.f32.gmra.mxu1 %vm238_vm1, %v3505_v48 }
  0x73   : > { %2816 = vmatmul.msk.f32.gmra.mxu2 %vm238_vm1, %v3528_v51 }
  0x74   : > { %2882 = vmatmul.msk.f32.gmra.mxu3 %vm238_vm1, %v3531_v52 }
  0x75   : > { %2948 = vmatmul.msk.f32.gmra.mxu0 %vm238_vm1, %v3457_v36 }
  0x7a   : > { %2783 = vmatmul.msk.f32.gmra.mxu1 %vm238_vm1, %v3518_v50 }
  0x7b   : > { %2817 = vmatmul.msk.f32.gmra.mxu2 %vm238_vm1, %v3542_v53 }
  0x7c   : > { %2883 = vmatmul.msk.f32.gmra.mxu3 %vm238_vm1, %v3545_v54 }
  0x7d   : > { %2949 = vmatmul.msk.f32.gmra.mxu0 %vm238_vm1, %v3477_v40 }
  0x82   : > { %2784 = vmatmul.msk.f32.gmra.mxu1 %vm238_vm1, %v3531_v52 }
  0x83   : > { %2818 = vmatmul.msk.f32.gmra.mxu2 %vm238_vm1, %v3556_v55 }
  0x84   : > { %2884 = vmatmul.msk.f32.gmra.mxu3 %vm238_vm1, %v3559_v56 }
  0x85   : > { %2950 = vmatmul.msk.f32.gmra.mxu0 %vm238_vm1, %v3324_v5 }
  0x8a   : > { %2785 = vmatmul.msk.f32.gmra.mxu1 %vm238_vm1, %v3545_v54 }
  0x8b   : > { %2819 = vmatmul.msk.f32.gmra.mxu2 %vm238_vm1, %v3570_v57 }
  0x8c   : > { %2885 = vmatmul.msk.f32.gmra.mxu3 %vm238_vm1, %v3573_v58 }
  0x8d   : > { %2951 = vmatmul.msk.f32.gmra.mxu0 %vm238_vm1, %v3341_v9 }
  0x8f   : > { %v3583_v59 = vpop.f32.mrf.mxu1 }
  0x92   : > { %v3591_v62 = vpop.f32.mrf.mxu0  ;;  %2786 = vmatmul.msk.f32.gmra.mxu1 %vm238_vm1, %v3559_v56 }
  0x93   : > { %2820 = vmatmul.msk.f32.gmra.mxu2 %vm238_vm1, %v3586_v60 }
  0x94   : > { %2886 = vmatmul.msk.f32.gmra.mxu3 %vm238_vm1, %v3589_v61 }
  0x95   : > { %2952 = vmatmul.msk.f32.gmra.mxu0 %vm238_vm1, %v3358_v13  ;;  %v3633_v13 = vld [vmem:[%s3321_s27 + $0x90] sm:$0xff] }
  0x96   : > { %v3601_v63 = vpop.f32.mrf.mxu2  ;;  %4488 = vst [vmem:[#allocation9_spill] sm:$0xff] %v3633_v13 }
  0x97   : > { %v3603_v0 = vpop.f32.mrf.mxu3  ;;  %v3605_v1 = vpop.f32.mrf.mxu1 }
  0x98   : > { %4483 = vst [vmem:[#allocation4_spill] sm:$0xff] %v3603_v0 }
  0x9a   : > { %v3613_v4 = vpop.f32.mrf.mxu0  ;;  %2787 = vmatmul.msk.f32.gmra.mxu1 %vm238_vm1, %v3573_v58  ;;  %v3778_v58 = vld [vmem:[%s3321_s27 + $0xe0] sm:$0xff] }
  0x9b   : > { %2821 = vmatmul.msk.f32.gmra.mxu2 %vm238_vm1, %v3608_v2  ;;  %v3775_v2 = vld [vmem:[%s3321_s27 + $0xca] sm:$0xff] }
  0x9c   : > { %2887 = vmatmul.msk.f32.gmra.mxu3 %vm238_vm1, %v3611_v3 }
  0x9d   : > { %2953 = vmatmul.msk.f32.gmra.mxu0 %vm238_vm1, %v3375_v17 }
  0x9e   : > { %v3623_v5 = vpop.f32.mrf.mxu2 }
  0x9f   : > { %v3625_v8 = vpop.f32.mrf.mxu3  ;;  %v3627_v9 = vpop.f32.mrf.mxu1 }
  0xa0   : > { %4486 = vst [vmem:[#allocation7_spill] sm:$0xff] %v3625_v8  ;;  %v3699_v8 = vld [vmem:[%s3321_s27 + $0xb0] sm:$0xff] }
  0xa1   : > { %4498 = vst [vmem:[#allocation19_spill] sm:$0xff] %v3699_v8 }
  0xa2   : > { %v3635_v16 = vpop.f32.mrf.mxu0  ;;  %2788 = vmatmul.msk.f32.gmra.mxu1 %vm238_vm1, %v3589_v61  ;;  %v3763_v61 = vld [vmem:[%s3321_s27 + $0xd8] sm:$0xff] }
  0xa3   : > { %2822 = vmatmul.msk.f32.gmra.mxu2 %vm238_vm1, %v3630_v12 }
  0xa4   : > { %2888 = vmatmul.msk.f32.gmra.mxu3 %vm238_vm1, %v3633_v13 }
  0xa5   : > { %2954 = vmatmul.msk.f32.gmra.mxu0 %vm238_vm1, %v3392_v21 }
  0xa6   : > { %v3645_v17 = vpop.f32.mrf.mxu2 }
  0xa7   : > { %v3647_v20 = vpop.f32.mrf.mxu3  ;;  %v3649_v25 = vpop.f32.mrf.mxu1 }
  0xa8   : > { %4489 = vst [vmem:[#allocation10_spill] sm:$0xff] %v3647_v20  ;;  %v3696_v20 = vld [vmem:[%s3321_s27 + $0x9a] sm:$0xff] }
  0xa9   : > { %4497 = vst [vmem:[#allocation18_spill] sm:$0xff] %v3696_v20 }
  0xaa   : > { %v3657_v32 = vpop.f32.mrf.mxu0  ;;  %2789 = vmatmul.msk.f32.gmra.mxu1 %vm238_vm1, %v3611_v3  ;;  %v3740_v3 = vld [vmem:[%s3321_s27 + $0xb2] sm:$0xff] }
  0xab   : > { %2823 = vmatmul.msk.f32.gmra.mxu2 %vm238_vm1, %v3652_v26  ;;  %4505 = vst [vmem:[#allocation26_spill] sm:$0xff] %v3740_v3 }
  0xac   : > { %2889 = vmatmul.msk.f32.gmra.mxu3 %vm238_vm1, %v3655_v27 }
  0xad   : > { %2955 = vmatmul.msk.f32.gmra.mxu0 %vm238_vm1, %v3424_v28 }
  0xae   : > { %v3667_v21 = vpop.f32.mrf.mxu2 }
  0xaf   : > { %v3669_v41 = vpop.f32.mrf.mxu3  ;;  %v3671_v42 = vpop.f32.mrf.mxu1 }
  0xb0   : > { %4492 = vst [vmem:[#allocation13_spill] sm:$0xff] %v3669_v41 }
  0xb2   : > { %v3679_v45 = vpop.f32.mrf.mxu0  ;;  %2790 = vmatmul.msk.f32.gmra.mxu1 %vm238_vm1, %v3633_v13  ;;  %v3718_v13 = vld [vmem:[%s3321_s27 + $0xaa] sm:$0xff] }
  0xb3   : > { %2824 = vmatmul.msk.f32.gmra.mxu2 %vm238_vm1, %v3674_v43  ;;  %4501 = vst [vmem:[#allocation22_spill] sm:$0xff] %v3718_v13 }
  0xb4   : > { %2890 = vmatmul.msk.f32.gmra.mxu3 %vm238_vm1, %v3677_v44 }
  0xb5   : > { %2956 = vmatmul.msk.f32.gmra.mxu0 %vm238_vm1, %v3448_v33 }
  0xb6   : > { %v3689_v28 = vpop.f32.mrf.mxu2 }
  0xb7   : > { %4495 = vst [vmem:[#allocation16_spill] sm:$0xff] %v3689_v28  ;;  %v3691_v46 = vpop.f32.mrf.mxu3  ;;  %v3693_v41 = vpop.f32.mrf.mxu1 }
  0xb8   : > { %4496 = vst [vmem:[#allocation17_spill] sm:$0xff] %v3691_v46 }
  0xba   : > { %v3701_v0 = vpop.f32.mrf.mxu0  ;;  %2791 = vmatmul.msk.f32.gmra.mxu1 %vm238_vm1, %v3655_v27  ;;  %v3721_v27 = vld [vmem:[%s3321_s27 + $0xc0] sm:$0xff] }
  0xbb   : > { %2825 = vmatmul.msk.f32.gmra.mxu2 %vm238_vm1, %v3696_v20  ;;  %4502 = vst [vmem:[#allocation23_spill] sm:$0xff] %v3721_v27 }
  0xbc   : > { %2891 = vmatmul.msk.f32.gmra.mxu3 %vm238_vm1, %v3699_v8 }
  0xbd   : > { %2957 = vmatmul.msk.f32.gmra.mxu0 %vm238_vm1, %v3468_v37 }
  0xbe   : > { %v3711_v33 = vpop.f32.mrf.mxu2 }
  0xbf   : > { %4499 = vst [vmem:[#allocation20_spill] sm:$0xff] %v3711_v33  ;;  %v3713_v46 = vpop.f32.mrf.mxu3  ;;  %v3715_v43 = vpop.f32.mrf.mxu1 }
  0xc0   : > { %4500 = vst [vmem:[#allocation21_spill] sm:$0xff] %v3713_v46 }
  0xc2   : > { %v3723_v26 = vpop.f32.mrf.mxu0  ;;  %2792 = vmatmul.msk.f32.gmra.mxu1 %vm238_vm1, %v3677_v44  ;;  %v3743_v44 = vld [vmem:[%s3321_s27 + $0xc8] sm:$0xff] }
  0xc3   : > { %2826 = vmatmul.msk.f32.gmra.mxu2 %vm238_vm1, %v3718_v13 }
  0xc4   : > { %2892 = vmatmul.msk.f32.gmra.mxu3 %vm238_vm1, %v3721_v27 }
  0xc5   : > { %2958 = vmatmul.msk.f32.gmra.mxu0 %vm238_vm1, %v3327_v6 }
  0xc6   : > { %v3733_v37 = vpop.f32.mrf.mxu2 }
  0xc7   : > { %4503 = vst [vmem:[#allocation24_spill] sm:$0xff] %v3733_v37  ;;  %v3735_v46 = vpop.f32.mrf.mxu3  ;;  %v3737_v20 = vpop.f32.mrf.mxu1  ;;  %v3760_v37 = vld [vmem:[%s3321_s27 + $0xc2] sm:$0xff] }
  0xc8   : > { %4504 = vst [vmem:[#allocation25_spill] sm:$0xff] %v3735_v46 }
  0xc9   : > { %4508 = vst [vmem:[#allocation29_spill] sm:$0xff] %v3760_v37 }
  0xca   : > { %v3745_v12 = vpop.f32.mrf.mxu0  ;;  %2793 = vmatmul.msk.f32.gmra.mxu1 %vm238_vm1, %v3699_v8 }
  0xcb   : > { %2827 = vmatmul.msk.f32.gmra.mxu2 %vm238_vm1, %v3740_v3 }
  0xcc   : > { %2893 = vmatmul.msk.f32.gmra.mxu3 %vm238_vm1, %v3743_v44 }
  0xcd   : > { %2959 = vmatmul.msk.f32.gmra.mxu0 %vm238_vm1, %v3344_v10 }
  0xce   : > { %v3755_v6 = vpop.f32.mrf.mxu2 }
  0xcf   : > { %4506 = vst [vmem:[#allocation27_spill] sm:$0xff] %v3755_v6  ;;  %v3757_v46 = vpop.f32.mrf.mxu3  ;;  %v568_v13 = vpop.f32.mrf.mxu1 }
  0xd0   : > { %4507 = vst [vmem:[#allocation28_spill] sm:$0xff] %v3757_v46  ;;  %v569_v10 = vadd.f32 %v568_v13, %v3591_v62 }
  0xd2   : > { %v1371_v8 = vpop.f32.mrf.mxu0  ;;  %2794 = vmatmul.msk.f32.gmra.mxu1 %vm238_vm1, %v3721_v27 }
  0xd3   : > { %2828 = vmatmul.msk.f32.gmra.mxu2 %vm238_vm1, %v3760_v37 }
  0xd4   : > { %2894 = vmatmul.msk.f32.gmra.mxu3 %vm238_vm1, %v3763_v61 }
  0xd5   : > { %2960 = vmatmul.msk.f32.gmra.mxu0 %vm238_vm1, %v3361_v14 }
  0xd6   : > { %v814_v46 = vpop.f32.mrf.mxu2 }
  0xd7   : > { %v910_v3 = vadd.f32 %v814_v46, %v569_v10  ;;  %v1093_v6 = vpop.f32.mrf.mxu3  ;;  %v571_v33 = vpop.f32.mrf.mxu1 }
  0xd8   : > { %v572_v14 = vadd.f32 %v571_v33, %v3613_v4 }
  0xd9   : > { %v1189_v27 = vadd.f32 %v1093_v6, %v910_v3  ;;  %v3795_v6 = vld [vmem:[%s3321_s27 + $0xf0] sm:$0xff] }
  0xda   : > { %v1374_v37 = vpop.f32.mrf.mxu0  ;;  %2795 = vmatmul.msk.f32.gmra.mxu1 %vm238_vm1, %v3743_v44 }
  0xdb   : > { %v3780_v28 = vadd.f32 %v1371_v8, %v1189_v27  ;;  %2829 = vmatmul.msk.f32.gmra.mxu2 %vm238_vm1, %v3775_v2  ;;  %v3792_v27 = vld [vmem:[%s3321_s27 + $0xda] sm:$0xff] }
  0xdc   : > { %2895 = vmatmul.msk.f32.gmra.mxu3 %vm238_vm1, %v3778_v58 }
  0xdd   : > { %4509 = vst [vmem:[#allocation30_spill] sm:$0xff] %v3780_v28  ;;  %2961 = vmatmul.msk.f32.gmra.mxu0 %vm238_vm1, %v3378_v18 }
  0xde   : > { %v817_v62 = vpop.f32.mrf.mxu2 }
  0xdf   : > { %v911_v3 = vadd.f32 %v817_v62, %v572_v14  ;;  %v1096_v13 = vpop.f32.mrf.mxu3  ;;  %v574_v8 = vpop.f32.mrf.mxu1  ;;  %v3809_v62 = vld [vmem:[%s3321_s27 + $0xe2] sm:$0xff] }
  0xe0   : > { %v575_v18 = vadd.f32 %v574_v8, %v3635_v16 }
  0xe1   : > { %v1190_v46 = vadd.f32 %v1096_v13, %v911_v3  ;;  %v3812_v13 = vld [vmem:[%s3321_s27 + $0xf8] sm:$0xff] }
  0xe2   : > { %v1377_v10 = vpop.f32.mrf.mxu0  ;;  %2796 = vmatmul.msk.f32.gmra.mxu1 %vm238_vm1, %v3763_v61 }
  0xe3   : > { %v3797_v28 = vadd.f32 %v1374_v37, %v1190_v46  ;;  %2830 = vmatmul.msk.f32.gmra.mxu2 %vm238_vm1, %v3792_v27 }
  0xe4   : > { %2896 = vmatmul.msk.f32.gmra.mxu3 %vm238_vm1, %v3795_v6 }
  0xe5   : > { %4510 = vst [vmem:[#allocation31_spill] sm:$0xff] %v3797_v28  ;;  %2962 = vmatmul.msk.f32.gmra.mxu0 %vm238_vm1, %v3395_v22 }
  0xe6   : > { %v820_v4 = vpop.f32.mrf.mxu2 }
  0xe7   : > { %v912_v33 = vadd.f32 %v820_v4, %v575_v18  ;;  %v1099_v14 = vpop.f32.mrf.mxu3  ;;  %v577_v37 = vpop.f32.mrf.mxu1  ;;  %v3826_v4 = vld [vmem:[%s3321_s27 + $0xf2] sm:$0xff] }
  0xe8   : > { %v578_v22 = vadd.f32 %v577_v37, %v3657_v32 }
  0xe9   : > { %v1191_v3 = vadd.f32 %v1099_v14, %v912_v33  ;;  %v3829_v14 = vld [vmem:[%s3321_s27 + $0x108] sm:$0xff] }
  0xea   : > { %v1380_v46 = vpop.f32.mrf.mxu0  ;;  %2797 = vmatmul.msk.f32.gmra.mxu1 %vm238_vm1, %v3778_v58 }
  0xeb   : > { %v3814_v28 = vadd.f32 %v1377_v10, %v1191_v3  ;;  %2831 = vmatmul.msk.f32.gmra.mxu2 %vm238_vm1, %v3809_v62 }
  0xec   : > { %2897 = vmatmul.msk.f32.gmra.mxu3 %vm238_vm1, %v3812_v13 }
  0xed   : > { %4511 = vst [vmem:[#allocation32_spill] sm:$0xff] %v3814_v28  ;;  %2963 = vmatmul.msk.f32.gmra.mxu0 %vm238_vm1, %v3427_v29 }
  0xee   : > { %v823_v16 = vpop.f32.mrf.mxu2 }
  0xef   : > { %v913_v8 = vadd.f32 %v823_v16, %v578_v22  ;;  %v1102_v18 = vpop.f32.mrf.mxu3  ;;  %v580_v10 = vpop.f32.mrf.mxu1  ;;  %v3843_v16 = vld [vmem:[%s3321_s27 + $0xfa] sm:$0xff] }
  0xf0   : > { %v581_v29 = vadd.f32 %v580_v10, %v3679_v45 }
  0xf1   : > { %v1192_v33 = vadd.f32 %v1102_v18, %v913_v8  ;;  %v3846_v18 = vld [vmem:[%s3321_s27 + $0x110] sm:$0xff] }
  0xf2   : > { %v1383_v3 = vpop.f32.mrf.mxu0  ;;  %2798 = vmatmul.msk.f32.gmra.mxu1 %vm238_vm1, %v3795_v6 }
  0xf3   : > { %v3831_v28 = vadd.f32 %v1380_v46, %v1192_v33  ;;  %2832 = vmatmul.msk.f32.gmra.mxu2 %vm238_vm1, %v3826_v4 }
  0xf4   : > { %2898 = vmatmul.msk.f32.gmra.mxu3 %vm238_vm1, %v3829_v14 }
  0xf5   : > { %4512 = vst [vmem:[#allocation33_spill] sm:$0xff] %v3831_v28  ;;  %2964 = vmatmul.msk.f32.gmra.mxu0 %vm238_vm1, %v3451_v34 }
  0xf6   : > { %v826_v32 = vpop.f32.mrf.mxu2 }
  0xf7   : > { %v914_v37 = vadd.f32 %v826_v32, %v581_v29  ;;  %v1105_v22 = vpop.f32.mrf.mxu3  ;;  %v583_v46 = vpop.f32.mrf.mxu1  ;;  %v3860_v32 = vld [vmem:[%s3321_s27 + $0x10a] sm:$0xff] }
  0xf8   : > { %v584_v34 = vadd.f32 %v583_v46, %v3701_v0 }
  0xf9   : > { %v1193_v8 = vadd.f32 %v1105_v22, %v914_v37  ;;  %v3863_v22 = vld [vmem:[%s3321_s27 + $0x120] sm:$0xff] }
  0xfa   : > { %v1386_v33 = vpop.f32.mrf.mxu0  ;;  %2799 = vmatmul.msk.f32.gmra.mxu1 %vm238_vm1, %v3812_v13 }
  0xfb   : > { %v3848_v28 = vadd.f32 %v1383_v3, %v1193_v8  ;;  %2833 = vmatmul.msk.f32.gmra.mxu2 %vm238_vm1, %v3843_v16 }
  0xfc   : > { %2899 = vmatmul.msk.f32.gmra.mxu3 %vm238_vm1, %v3846_v18 }
  0xfd   : > { %4513 = vst [vmem:[#allocation34_spill] sm:$0xff] %v3848_v28  ;;  %2965 = vmatmul.msk.f32.gmra.mxu0 %vm238_vm1, %v3471_v38 }
  0xfe   : > { %v829_v45 = vpop.f32.mrf.mxu2 }
  0xff   : > { %v915_v10 = vadd.f32 %v829_v45, %v584_v34  ;;  %v1108_v29 = vpop.f32.mrf.mxu3  ;;  %v586_v3 = vpop.f32.mrf.mxu1  ;;  %v3877_v45 = vld [vmem:[%s3321_s27 + $0x112] sm:$0xff] }
 0x100   : > { %v587_v38 = vadd.f32 %v586_v3, %v3723_v26 }
 0x101   : > { %v1194_v37 = vadd.f32 %v1108_v29, %v915_v10  ;;  %v3880_v29 = vld [vmem:[%s3321_s27 + $0x128] sm:$0xff] }
 0x102   : > { %v1389_v8 = vpop.f32.mrf.mxu0  ;;  %2800 = vmatmul.msk.f32.gmra.mxu1 %vm238_vm1, %v3829_v14 }
 0x103   : > { %v3865_v28 = vadd.f32 %v1386_v33, %v1194_v37  ;;  %2834 = vmatmul.msk.f32.gmra.mxu2 %vm238_vm1, %v3860_v32 }
 0x104   : > { %2900 = vmatmul.msk.f32.gmra.mxu3 %vm238_vm1, %v3863_v22 }
 0x105   : > { %4514 = vst [vmem:[#allocation35_spill] sm:$0xff] %v3865_v28  ;;  %2966 = vmatmul.msk.f32.gmra.mxu0 %vm238_vm1, %v3330_v7 }
 0x106   : > { %v832_v0 = vpop.f32.mrf.mxu2 }
 0x107   : > { %v916_v46 = vadd.f32 %v832_v0, %v587_v38  ;;  %v1111_v34 = vpop.f32.mrf.mxu3  ;;  %v589_v33 = vpop.f32.mrf.mxu1  ;;  %v3894_v0 = vld [vmem:[%s3321_s27 + $0x122] sm:$0xff] }
 0x108   : > { %v590_v7 = vadd.f32 %v589_v33, %v3745_v12 }
 0x109   : > { %v1195_v10 = vadd.f32 %v1111_v34, %v916_v46  ;;  %v3897_v34 = vld [vmem:[%s3321_s27 + $0x138] sm:$0xff] }
 0x10a   : > { %v1392_v37 = vpop.f32.mrf.mxu0  ;;  %2801 = vmatmul.msk.f32.gmra.mxu1 %vm238_vm1, %v3846_v18 }
 0x10b   : > { %v3882_v28 = vadd.f32 %v1389_v8, %v1195_v10  ;;  %2835 = vmatmul.msk.f32.gmra.mxu2 %vm238_vm1, %v3877_v45 }
 0x10c   : > { %2901 = vmatmul.msk.f32.gmra.mxu3 %vm238_vm1, %v3880_v29 }
 0x10d   : > { %4515 = vst [vmem:[#allocation36_spill] sm:$0xff] %v3882_v28  ;;  %2967 = vmatmul.msk.f32.gmra.mxu0 %vm238_vm1, %v3347_v11 }
 0x10e   : > { %v835_v26 = vpop.f32.mrf.mxu2 }
 0x10f   : > { %v917_v3 = vadd.f32 %v835_v26, %v590_v7  ;;  %v1114_v38 = vpop.f32.mrf.mxu3  ;;  %v592_v8 = vpop.f32.mrf.mxu1  ;;  %v3911_v26 = vld [vmem:[%s3321_s27 + $0x12a] sm:$0xff] }
 0x110   : > { %v593_v11 = vadd.f32 %v592_v8, %v3583_v59 }
 0x111   : > { %v1196_v46 = vadd.f32 %v1114_v38, %v917_v3  ;;  %v3914_v38 = vld [vmem:[%s3321_s27 + $0x140] sm:$0xff] }
 0x112   : > { %v1395_v10 = vpop.f32.mrf.mxu0  ;;  %2802 = vmatmul.msk.f32.gmra.mxu1 %vm238_vm1, %v3863_v22 }
 0x113   : > { %v3899_v28 = vadd.f32 %v1392_v37, %v1196_v46  ;;  %2836 = vmatmul.msk.f32.gmra.mxu2 %vm238_vm1, %v3894_v0 }
 0x114   : > { %2902 = vmatmul.msk.f32.gmra.mxu3 %vm238_vm1, %v3897_v34 }
 0x115   : > { %4516 = vst [vmem:[#allocation37_spill] sm:$0xff] %v3899_v28  ;;  %2968 = vmatmul.msk.f32.gmra.mxu0 %vm238_vm1, %v3364_v15 }
 0x116   : > { %v838_v12 = vpop.f32.mrf.mxu2 }
 0x117   : > { %v918_v33 = vadd.f32 %v838_v12, %v593_v11  ;;  %v1117_v7 = vpop.f32.mrf.mxu3  ;;  %v595_v37 = vpop.f32.mrf.mxu1  ;;  %v3928_v12 = vld [vmem:[%s3321_s27 + $0x13a] sm:$0xff] }
 0x118   : > { %v596_v15 = vadd.f32 %v595_v37, %v3605_v1 }
 0x119   : > { %v1197_v3 = vadd.f32 %v1117_v7, %v918_v33  ;;  %v3931_v7 = vld [vmem:[%s3321_s27 + $0x150] sm:$0xff] }
 0x11a   : > { %v1398_v46 = vpop.f32.mrf.mxu0  ;;  %2803 = vmatmul.msk.f32.gmra.mxu1 %vm238_vm1, %v3880_v29 }
 0x11b   : > { %v3916_v28 = vadd.f32 %v1395_v10, %v1197_v3  ;;  %2837 = vmatmul.msk.f32.gmra.mxu2 %vm238_vm1, %v3911_v26 }
 0x11c   : > { %2903 = vmatmul.msk.f32.gmra.mxu3 %vm238_vm1, %v3914_v38 }
 0x11d   : > { %4517 = vst [vmem:[#allocation38_spill] sm:$0xff] %v3916_v28  ;;  %2969 = vmatmul.msk.f32.gmra.mxu0 %vm238_vm1, %v3381_v19 }
 0x11e   : > { %v841_v59 = vpop.f32.mrf.mxu2 }
 0x11f   : > { %v919_v8 = vadd.f32 %v841_v59, %v596_v15  ;;  %v1120_v11 = vpop.f32.mrf.mxu3  ;;  %v598_v10 = vpop.f32.mrf.mxu1  ;;  %v3945_v59 = vld [vmem:[%s3321_s27 + $0x142] sm:$0xff] }
 0x120   : > { %v599_v19 = vadd.f32 %v598_v10, %v3627_v9 }
 0x121   : > { %v1198_v33 = vadd.f32 %v1120_v11, %v919_v8  ;;  %v3948_v11 = vld [vmem:[%s3321_s27 + $0x158] sm:$0xff] }
 0x122   : > { %v1401_v3 = vpop.f32.mrf.mxu0  ;;  %2804 = vmatmul.msk.f32.gmra.mxu1 %vm238_vm1, %v3897_v34 }
 0x123   : > { %v3933_v28 = vadd.f32 %v1398_v46, %v1198_v33  ;;  %2838 = vmatmul.msk.f32.gmra.mxu2 %vm238_vm1, %v3928_v12 }
 0x124   : > { %2904 = vmatmul.msk.f32.gmra.mxu3 %vm238_vm1, %v3931_v7 }
 0x125   : > { %4518 = vst [vmem:[#allocation39_spill] sm:$0xff] %v3933_v28  ;;  %2970 = vmatmul.msk.f32.gmra.mxu0 %vm238_vm1, %v3398_v23 }
 0x126   : > { %v844_v1 = vpop.f32.mrf.mxu2 }
 0x127   : > { %v920_v37 = vadd.f32 %v844_v1, %v599_v19  ;;  %v1123_v15 = vpop.f32.mrf.mxu3  ;;  %v601_v46 = vpop.f32.mrf.mxu1  ;;  %v3962_v1 = vld [vmem:[%s3321_s27 + $0x152] sm:$0xff] }
 0x128   : > { %v602_v23 = vadd.f32 %v601_v46, %v3649_v25 }
 0x129   : > { %v1199_v8 = vadd.f32 %v1123_v15, %v920_v37  ;;  %v3965_v15 = vld [vmem:[%s3321_s27 + $0x168] sm:$0xff] }
 0x12a   : > { %v1404_v33 = vpop.f32.mrf.mxu0  ;;  %2805 = vmatmul.msk.f32.gmra.mxu1 %vm238_vm1, %v3914_v38 }
 0x12b   : > { %v3950_v28 = vadd.f32 %v1401_v3, %v1199_v8  ;;  %2839 = vmatmul.msk.f32.gmra.mxu2 %vm238_vm1, %v3945_v59 }
 0x12c   : > { %2905 = vmatmul.msk.f32.gmra.mxu3 %vm238_vm1, %v3948_v11 }
 0x12d   : > { %4519 = vst [vmem:[#allocation40_spill] sm:$0xff] %v3950_v28  ;;  %2971 = vmatmul.msk.f32.gmra.mxu0 %vm238_vm1, %v3430_v30 }
 0x12e   : > { %v847_v9 = vpop.f32.mrf.mxu2 }
 0x12f   : > { %v921_v10 = vadd.f32 %v847_v9, %v602_v23  ;;  %v1126_v19 = vpop.f32.mrf.mxu3  ;;  %v604_v3 = vpop.f32.mrf.mxu1  ;;  %v3979_v9 = vld [vmem:[%s3321_s27 + $0x15a] sm:$0xff] }
 0x130   : > { %v605_v30 = vadd.f32 %v604_v3, %v3671_v42  ;;  %4521 = vst [vmem:[#allocation42_spill] sm:$0xff] %v3979_v9 }
 0x131   : > { %v1200_v37 = vadd.f32 %v1126_v19, %v921_v10  ;;  %v3982_v19 = vld [vmem:[%s3321_s27 + $0x170] sm:$0xff] }
 0x132   : > { %v1407_v8 = vpop.f32.mrf.mxu0  ;;  %2806 = vmatmul.msk.f32.gmra.mxu1 %vm238_vm1, %v3931_v7 }
 0x133   : > { %v3967_v28 = vadd.f32 %v1404_v33, %v1200_v37  ;;  %2840 = vmatmul.msk.f32.gmra.mxu2 %vm238_vm1, %v3962_v1 }
 0x134   : > { %2906 = vmatmul.msk.f32.gmra.mxu3 %vm238_vm1, %v3965_v15 }
 0x135   : > { %4520 = vst [vmem:[#allocation41_spill] sm:$0xff] %v3967_v28  ;;  %2972 = vmatmul.msk.f32.gmra.mxu0 %vm238_vm1, %v3454_v35 }
 0x136   : > { %v850_v25 = vpop.f32.mrf.mxu2 }
 0x137   : > { %v922_v46 = vadd.f32 %v850_v25, %v605_v30  ;;  %v1129_v23 = vpop.f32.mrf.mxu3  ;;  %v607_v33 = vpop.f32.mrf.mxu1 }
 0x138   : > { %v608_v35 = vadd.f32 %v607_v33, %v3693_v41 }
 0x139   : > { %v1201_v10 = vadd.f32 %v1129_v23, %v922_v46  ;;  %v3999_v23 = vld [vmem:[%s3321_s27 + $0x180] sm:$0xff] }
 0x13a   : > { %v1410_v37 = vpop.f32.mrf.mxu0  ;;  %2807 = vmatmul.msk.f32.gmra.mxu1 %vm238_vm1, %v3948_v11 }
 0x13b   : > { %v3984_v28 = vadd.f32 %v1407_v8, %v1201_v10  ;;  %2841 = vmatmul.msk.f32.gmra.mxu2 %vm238_vm1, %v3979_v9  ;;  %v3996_v8 = vld [vmem:[%s3321_s27 + $0x16a] sm:$0xff] }
 0x13c   : > { %2907 = vmatmul.msk.f32.gmra.mxu3 %vm238_vm1, %v3982_v19  ;;  %4523 = vst [vmem:[#allocation44_spill] sm:$0xff] %v3996_v8 }
 0x13d   : > { %4522 = vst [vmem:[#allocation43_spill] sm:$0xff] %v3984_v28  ;;  %2973 = vmatmul.msk.f32.gmra.mxu0 %vm238_vm1, %v3474_v39  ;;  %v4002_v28 = vld [vmem:[%s3321_s27 + $0x181] sm:$0xff] }
 0x13e   : > { %v853_v42 = vpop.f32.mrf.mxu2 }
 0x13f   : > { %v923_v3 = vadd.f32 %v853_v42, %v608_v35  ;;  %v1132_v30 = vpop.f32.mrf.mxu3  ;;  %v610_v25 = vpop.f32.mrf.mxu1 }
 0x140   : > { %v611_v39 = vadd.f32 %v610_v25, %v3715_v43 }
 0x141   : > { %v1202_v46 = vadd.f32 %v1132_v30, %v923_v3  ;;  %v4019_v30 = vld [vmem:[%s3321_s27 + $0x188] sm:$0xff] }
 0x142   : > { %v1413_v10 = vpop.f32.mrf.mxu0  ;;  %2808 = vmatmul.msk.f32.gmra.mxu1 %vm238_vm1, %v3965_v15 }
 0x143   : > { %v4004_v9 = vadd.f32 %v1410_v37, %v1202_v46  ;;  %2842 = vmatmul.msk.f32.gmra.mxu2 %vm238_vm1, %v3996_v8  ;;  %v4016_v37 = vld [vmem:[%s3321_s27 + $0x172] sm:$0xff] }
 0x144   : > { %2908 = vmatmul.msk.f32.gmra.mxu3 %vm238_vm1, %v3999_v23 }
 0x145   : > { %4524 = vst [vmem:[#allocation45_spill] sm:$0xff] %v4004_v9  ;;  %2974 = vmatmul.msk.f32.gmra.mxu0 %vm238_vm1, %v4002_v28  ;;  %v4022_v9 = vld [vmem:[%s3321_s27 + $0x189] sm:$0xff] }
 0x146   : > { %v856_v41 = vpop.f32.mrf.mxu2 }
 0x147   : > { %v924_v33 = vadd.f32 %v856_v41, %v611_v39  ;;  %v1135_v35 = vpop.f32.mrf.mxu3  ;;  %v613_v42 = vpop.f32.mrf.mxu1 }
 0x148   : > { %v614_v43 = vadd.f32 %v613_v42, %v3737_v20 }
 0x149   : > { %v1203_v3 = vadd.f32 %v1135_v35, %v924_v33 }
 0x14a   : > { %v1416_v46 = vpop.f32.mrf.mxu0  ;;  %2809 = vmatmul.msk.f32.gmra.mxu1 %vm238_vm1, %v3982_v19 }
 0x14b   : > { %v4024_v8 = vadd.f32 %v1413_v10, %v1203_v3  ;;  %2843 = vmatmul.msk.f32.gmra.mxu2 %vm238_vm1, %v4016_v37 }
 0x14c   : > { %2909 = vmatmul.msk.f32.gmra.mxu3 %vm238_vm1, %v4019_v30 }
 0x14d   : > { %2975 = vmatmul.msk.f32.gmra.mxu0 %vm238_vm1, %v4022_v9 }
 0x14e   : > { %v859_v25 = vpop.f32.mrf.mxu2 }
 0x14f   : > { %v925_v39 = vadd.f32 %v859_v25, %v614_v43  ;;  %v1138_v41 = vpop.f32.mrf.mxu3  ;;  %v616_v33 = vpop.f32.mrf.mxu1 }
 0x150   : > { %v617_v20 = vadd.f32 %v616_v33, %v3601_v63 }
 0x151   : > { %v1204_v10 = vadd.f32 %v1138_v41, %v925_v39 }
 0x152   : > { %v1419_v35 = vpop.f32.mrf.mxu0  ;;  %3010 = vmatmul.msk.f32.vlgmr.msra.gmra.mxu1 %vm238_vm1, %v3502_v47 }
 0x153   : > { %v4035_v3 = vadd.f32 %v1416_v46, %v1204_v10  ;;  %3076 = vmatmul.msk.f32.vlgmr.msra.gmra.mxu2 %vm238_vm1, %v3505_v48 }
 0x154   : > { %3142 = vmatmul.msk.f32.vlgmr.msra.gmra.mxu3 %vm238_vm1, %v3401_v24 }
 0x155   : > { %3208 = vmatmul.msk.f32.vlgmr.msra.gmra.mxu0 %vm238_vm1, %v3528_v51 }
 0x156   : > { %v862_v42 = vpop.f32.mrf.mxu2 }
 0x157   : > { %v926_v43 = vadd.f32 %v862_v42, %v617_v20  ;;  %v1141_v25 = vpop.f32.mrf.mxu3  ;;  %v619_v39 = vpop.f32.mrf.mxu1 }
 0x158   : > { %v620_v24 = vadd.f32 %v619_v39, %v3623_v5 }
 0x159   : > { %v1205_v46 = vadd.f32 %v1141_v25, %v926_v43 }
 0x15a   : > { %v1422_v41 = vpop.f32.mrf.mxu0  ;;  %3011 = vmatmul.msk.f32.gmra.mxu1 %vm238_vm1, %v3515_v49 }
 0x15b   : > { %v4046_v10 = vadd.f32 %v1419_v35, %v1205_v46  ;;  %3077 = vmatmul.msk.f32.gmra.mxu2 %vm238_vm1, %v3518_v50 }
 0x15c   : > { %3143 = vmatmul.msk.f32.gmra.mxu3 %vm238_vm1, %v3433_v31 }
 0x15d   : > { %3209 = vmatmul.msk.f32.gmra.mxu0 %vm238_vm1, %v3542_v53 }
 0x15e   : > { %v865_v47 = vpop.f32.mrf.mxu2 }
 0x15f   : > { %v927_v48 = vadd.f32 %v865_v47, %v620_v24  ;;  %v1144_v63 = vpop.f32.mrf.mxu3  ;;  %v622_v33 = vpop.f32.mrf.mxu1  ;;  %v3112_v47 = vld [vmem:[%s3321_s27 + $0x61] sm:$0xff] }
 0x160   : > { %v623_v31 = vadd.f32 %v622_v33, %v3645_v17 }
 0x161   : > { %v1206_v35 = vadd.f32 %v1144_v63, %v927_v48 }
 0x162   : > { %v1425_v20 = vpop.f32.mrf.mxu0  ;;  %3012 = vmatmul.msk.f32.gmra.mxu1 %vm238_vm1, %v3528_v51 }
 0x163   : > { %v4057_v42 = vadd.f32 %v1422_v41, %v1206_v35  ;;  %3078 = vmatmul.msk.f32.gmra.mxu2 %vm238_vm1, %v3531_v52 }
 0x164   : > { %3144 = vmatmul.msk.f32.gmra.mxu3 %vm238_vm1, %v3457_v36 }
 0x165   : > { %3210 = vmatmul.msk.f32.gmra.mxu0 %vm238_vm1, %v3556_v55 }
 0x166   : > { %v868_v49 = vpop.f32.mrf.mxu2 }
 0x167   : > { %v928_v50 = vadd.f32 %v868_v49, %v623_v31  ;;  %v1147_v5 = vpop.f32.mrf.mxu3  ;;  %v625_v43 = vpop.f32.mrf.mxu1  ;;  %v3113_v31 = vld [vmem:[%s3321_s27 + $0x69] sm:$0xff] }
 0x168   : > { %v626_v36 = vadd.f32 %v625_v43, %v3667_v21 }
 0x169   : > { %v1207_v25 = vadd.f32 %v1147_v5, %v928_v50  ;;  %v4528_v5 = vld [vmem:[#allocation20_spill] sm:$0xff] }
 0x16a   : > { %v1428_v39 = vpop.f32.mrf.mxu0  ;;  %3013 = vmatmul.msk.f32.gmra.mxu1 %vm238_vm1, %v3542_v53 }
 0x16b   : > { %v4068_v46 = vadd.f32 %v1425_v20, %v1207_v25  ;;  %3079 = vmatmul.msk.f32.gmra.mxu2 %vm238_vm1, %v3545_v54 }
 0x16c   : > { %3145 = vmatmul.msk.f32.gmra.mxu3 %vm238_vm1, %v3477_v40  ;;  %v4525_v40 = vld [vmem:[#allocation16_spill] sm:$0xff] }
 0x16d   : > { %3211 = vmatmul.msk.f32.gmra.mxu0 %vm238_vm1, %v3570_v57 }
 0x16e   : > { %v871_v51 = vpop.f32.mrf.mxu2 }
 0x16f   : > { %v929_v52 = vadd.f32 %v871_v51, %v626_v36  ;;  %v1150_v17 = vpop.f32.mrf.mxu3  ;;  %v628_v41 = vpop.f32.mrf.mxu1 }
 0x170   : > { %v629_v54 = vadd.f32 %v628_v41, %v4525_v40 }
 0x171   : > { %v1208_v24 = vadd.f32 %v1150_v17, %v929_v52  ;;  %v3114_v17 = vld [vmem:[%s3321_s27 + $0x79] sm:$0xff] }
 0x172   : > { %v1431_v48 = vpop.f32.mrf.mxu0  ;;  %3014 = vmatmul.msk.f32.gmra.mxu1 %vm238_vm1, %v3556_v55  ;;  %v4526_v55 = vld [vmem:[#allocation2_spill] sm:$0xff] }
 0x173   : > { %v4080_v53 = vadd.f32 %v1428_v39, %v1208_v24  ;;  %3080 = vmatmul.msk.f32.gmra.mxu2 %vm238_vm1, %v3559_v56  ;;  %v4527_v56 = vld [vmem:[#allocation5_spill] sm:$0xff] }
 0x174   : > { %3146 = vmatmul.msk.f32.gmra.mxu3 %vm238_vm1, %v3112_v47  ;;  %v4530_v47 = vld [vmem:[#allocation8_spill] sm:$0xff] }
 0x175   : > { %3212 = vmatmul.msk.f32.gmra.mxu0 %vm238_vm1, %v3586_v60 }
 0x176   : > { %v874_v21 = vpop.f32.mrf.mxu2 }
 0x177   : > { %v930_v63 = vadd.f32 %v874_v21, %v629_v54  ;;  %v1153_v33 = vpop.f32.mrf.mxu3  ;;  %v631_v35 = vpop.f32.mrf.mxu1 }
 0x178   : > { %v632_v43 = vadd.f32 %v631_v35, %v4528_v5  ;;  %v4534_v5 = vld [vmem:[#allocation27_spill] sm:$0xff] }
 0x179   : > { %v1209_v20 = vadd.f32 %v1153_v33, %v930_v63 }
 0x17a   : > { %v1434_v49 = vpop.f32.mrf.mxu0  ;;  %3015 = vmatmul.msk.f32.gmra.mxu1 %vm238_vm1, %v3570_v57  ;;  %v4529_v57 = vld [vmem:[#allocation3_spill] sm:$0xff] }
 0x17b   : > { %v4091_v50 = vadd.f32 %v1431_v48, %v1209_v20  ;;  %3081 = vmatmul.msk.f32.gmra.mxu2 %vm238_vm1, %v4526_v55  ;;  %v4531_v48 = vld [vmem:[#allocation24_spill] sm:$0xff]  ;;  %v3115_v20 = vld [vmem:[%s3321_s27 + $0x81] sm:$0xff] }
 0x17c   : > { %3147 = vmatmul.msk.f32.gmra.mxu3 %vm238_vm1, %v3113_v31  ;;  %v4533_v55 = vld [vmem:[#allocation11_spill] sm:$0xff] }
 0x17d   : > { %3213 = vmatmul.msk.f32.gmra.mxu0 %vm238_vm1, %v4527_v56 }
 0x17e   : > { %v877_v25 = vpop.f32.mrf.mxu2 }
 0x17f   : > { %v931_v39 = vadd.f32 %v877_v25, %v632_v43  ;;  %v1156_v36 = vpop.f32.mrf.mxu3  ;;  %v634_v51 = vpop.f32.mrf.mxu1 }
 0x180   : > { %v635_v40 = vadd.f32 %v634_v51, %v4531_v48  ;;  %v4536_v48 = vld [vmem:[#allocation14_spill] sm:$0xff] }
 0x181   : > { %v1210_v52 = vadd.f32 %v1156_v36, %v931_v39 }
 0x182   : > { %v1437_v41 = vpop.f32.mrf.mxu0  ;;  %3016 = vmatmul.msk.f32.gmra.mxu1 %vm238_vm1, %v3586_v60  ;;  %v4532_v60 = vld [vmem:[#allocation6_spill] sm:$0xff] }
 0x183   : > { %v4102_v24 = vadd.f32 %v1434_v49, %v1210_v52  ;;  %3082 = vmatmul.msk.f32.gmra.mxu2 %vm238_vm1, %v4529_v57 }
 0x184   : > { %3148 = vmatmul.msk.f32.gmra.mxu3 %vm238_vm1, %v3114_v17  ;;  %v3116_v17 = vld [vmem:[%s3321_s27 + $0x91] sm:$0xff] }
 0x185   : > { %3214 = vmatmul.msk.f32.gmra.mxu0 %vm238_vm1, %v4530_v47 }
 0x186   : > { %v880_v54 = vpop.f32.mrf.mxu2 }
 0x187   : > { %v932_v21 = vadd.f32 %v880_v54, %v635_v40  ;;  %v1159_v63 = vpop.f32.mrf.mxu3  ;;  %v637_v33 = vpop.f32.mrf.mxu1  ;;  %v4537_v40 = vld [vmem:[#allocation4_spill] sm:$0xff] }
 0x188   : > { %v638_v43 = vadd.f32 %v637_v33, %v4534_v5 }
 0x189   : > { %v1211_v35 = vadd.f32 %v1159_v63, %v932_v21 }
 0x18a   : > { %v1440_v31 = vpop.f32.mrf.mxu0  ;;  %3017 = vmatmul.msk.f32.gmra.mxu1 %vm238_vm1, %v4527_v56  ;;  %v4535_v56 = vld [vmem:[#allocation9_spill] sm:$0xff] }
 0x18b   : > { %v4113_v49 = vadd.f32 %v1437_v41, %v1211_v35  ;;  %3083 = vmatmul.msk.f32.gmra.mxu2 %vm238_vm1, %v4532_v60 }
 0x18c   : > { %3149 = vmatmul.msk.f32.gmra.mxu3 %vm238_vm1, %v3115_v20 }
 0x18d   : > { %3215 = vmatmul.msk.f32.gmra.mxu0 %vm238_vm1, %v4533_v55 }
 0x18e   : > { %v883_v25 = vpop.f32.mrf.mxu2 }
 0x18f   : > { %v933_v39 = vadd.f32 %v883_v25, %v638_v43  ;;  %v1162_v36 = vpop.f32.mrf.mxu3  ;;  %v640_v51 = vpop.f32.mrf.mxu1  ;;  %v4539_v43 = vld [vmem:[#allocation18_spill] sm:$0xff]  ;;  %v4540_v25 = vld [vmem:[#allocation7_spill] sm:$0xff] }
 0x190   : > { %v641_v54 = vadd.f32 %v640_v51, %v4537_v40 }
 0x191   : > { %v1212_v52 = vadd.f32 %v1162_v36, %v933_v39 }
 0x192   : > { %v1443_v41 = vpop.f32.mrf.mxu0  ;;  %3018 = vmatmul.msk.f32.gmra.mxu1 %vm238_vm1, %v4530_v47  ;;  %v4538_v47 = vld [vmem:[#allocation12_spill] sm:$0xff] }
 0x193   : > { %v4124_v57 = vadd.f32 %v1440_v31, %v1212_v52  ;;  %3084 = vmatmul.msk.f32.gmra.mxu2 %vm238_vm1, %v4535_v56  ;;  %v3117_v31 = vld [vmem:[%s3321_s27 + $0x99] sm:$0xff]  ;;  %v3118_v56 = vld [vmem:[%s3321_s27 + $0xa9] sm:$0xff] }
 0x194   : > { %3150 = vmatmul.msk.f32.gmra.mxu3 %vm238_vm1, %v3116_v17 }
 0x195   : > { %3216 = vmatmul.msk.f32.gmra.mxu0 %vm238_vm1, %v4536_v48 }
 0x196   : > { %v886_v21 = vpop.f32.mrf.mxu2 }
 0x197   : > { %v934_v63 = vadd.f32 %v886_v21, %v641_v54  ;;  %v1165_v33 = vpop.f32.mrf.mxu3  ;;  %v643_v35 = vpop.f32.mrf.mxu1  ;;  %v4542_v21 = vld [vmem:[#allocation22_spill] sm:$0xff] }
 0x198   : > { %v644_v39 = vadd.f32 %v643_v35, %v4540_v25  ;;  %v3119_v25 = vld [vmem:[%s3321_s27 + $0xb1] sm:$0xff] }
 0x199   : > { %v1213_v20 = vadd.f32 %v1165_v33, %v934_v63  ;;  %v4543_v63 = vld [vmem:[#allocation10_spill] sm:$0xff] }
 0x19a   : > { %v1446_v60 = vpop.f32.mrf.mxu0  ;;  %3019 = vmatmul.msk.f32.gmra.mxu1 %vm238_vm1, %v4533_v55  ;;  %v4541_v55 = vld [vmem:[#allocation15_spill] sm:$0xff] }
 0x19b   : > { %v4135_v5 = vadd.f32 %v1443_v41, %v1213_v20  ;;  %3085 = vmatmul.msk.f32.gmra.mxu2 %vm238_vm1, %v4538_v47 }
 0x19c   : > { %3151 = vmatmul.msk.f32.gmra.mxu3 %vm238_vm1, %v3117_v31 }
 0x19d   : > { %3217 = vmatmul.msk.f32.gmra.mxu0 %vm238_vm1, %v4539_v43 }
 0x19e   : > { %v889_v36 = vpop.f32.mrf.mxu2 }
 0x19f   : > { %v935_v51 = vadd.f32 %v889_v36, %v644_v39  ;;  %v1168_v52 = vpop.f32.mrf.mxu3  ;;  %v646_v17 = vpop.f32.mrf.mxu1 }
 0x1a0   : > { %v647_v33 = vadd.f32 %v646_v17, %v4543_v63 }
 0x1a1   : > { %v1214_v41 = vadd.f32 %v1168_v52, %v935_v51  ;;  %v4545_v51 = vld [vmem:[#allocation26_spill] sm:$0xff]  ;;  %v4546_v52 = vld [vmem:[#allocation13_spill] sm:$0xff] }
 0x1a2   : > { %v1449_v40 = vpop.f32.mrf.mxu0  ;;  %3020 = vmatmul.msk.f32.gmra.mxu1 %vm238_vm1, %v4536_v48  ;;  %v4544_v48 = vld [vmem:[#allocation19_spill] sm:$0xff] }
 0x1a3   : > { %v4146_v54 = vadd.f32 %v1446_v60, %v1214_v41  ;;  %3086 = vmatmul.msk.f32.gmra.mxu2 %vm238_vm1, %v4541_v55 }
 0x1a4   : > { %3152 = vmatmul.msk.f32.gmra.mxu3 %vm238_vm1, %v3118_v56 }
 0x1a5   : > { %3218 = vmatmul.msk.f32.gmra.mxu0 %vm238_vm1, %v4542_v21 }
 0x1a6   : > { %v892_v35 = vpop.f32.mrf.mxu2 }
 0x1a7   : > { %v936_v20 = vadd.f32 %v892_v35, %v647_v33  ;;  %v1171_v31 = vpop.f32.mrf.mxu3  ;;  %v649_v47 = vpop.f32.mrf.mxu1  ;;  %v3120_v33 = vld [vmem:[%s3321_s27 + $0xc1] sm:$0xff] }
 0x1a8   : > { %v650_v17 = vadd.f32 %v649_v47, %v4546_v52  ;;  %v4549_v47 = vld [vmem:[#allocation17_spill] sm:$0xff] }
 0x1a9   : > { %v1215_v60 = vadd.f32 %v1171_v31, %v936_v20  ;;  %v4548_v31 = vld [vmem:[#allocation29_spill] sm:$0xff] }
 0x1aa   : > { %v1452_v39 = vpop.f32.mrf.mxu0  ;;  %3021 = vmatmul.msk.f32.gmra.mxu1 %vm238_vm1, %v4539_v43  ;;  %v4547_v43 = vld [vmem:[#allocation23_spill] sm:$0xff] }
 0x1ab   : > { %v4157_v36 = vadd.f32 %v1449_v40, %v1215_v60  ;;  %3087 = vmatmul.msk.f32.gmra.mxu2 %vm238_vm1, %v4544_v48 }
 0x1ac   : > { %3153 = vmatmul.msk.f32.gmra.mxu3 %vm238_vm1, %v3119_v25 }
 0x1ad   : > { %3219 = vmatmul.msk.f32.gmra.mxu0 %vm238_vm1, %v4545_v51 }
 0x1ae   : > { %v895_v41 = vpop.f32.mrf.mxu2 }
 0x1af   : > { %v937_v56 = vadd.f32 %v895_v41, %v650_v17  ;;  %v1174_v55 = vpop.f32.mrf.mxu3  ;;  %v652_v63 = vpop.f32.mrf.mxu1  ;;  %v3121_v41 = vld [vmem:[%s3321_s27 + $0xc9] sm:$0xff] }
 0x1b0   : > { %v653_v60 = vadd.f32 %v652_v63, %v4549_v47 }
 0x1b1   : > { %v1216_v40 = vadd.f32 %v1174_v55, %v937_v56 }
 0x1b2   : > { %v1455_v35 = vpop.f32.mrf.mxu0  ;;  %3022 = vmatmul.msk.f32.gmra.mxu1 %vm238_vm1, %v4542_v21  ;;  %v4550_v21 = vld [vmem:[#allocation21_spill] sm:$0xff] }
 0x1b3   : > { %v4168_v20 = vadd.f32 %v1452_v39, %v1216_v40  ;;  %3088 = vmatmul.msk.f32.gmra.mxu2 %vm238_vm1, %v4547_v43 }
 0x1b4   : > { %3154 = vmatmul.msk.f32.gmra.mxu3 %vm238_vm1, %v3120_v33 }
 0x1b5   : > { %3220 = vmatmul.msk.f32.gmra.mxu0 %vm238_vm1, %v4548_v31 }
 0x1b6   : > { %v898_v25 = vpop.f32.mrf.mxu2 }
 0x1b7   : > { %v938_v48 = vadd.f32 %v898_v25, %v653_v60  ;;  %v1177_v52 = vpop.f32.mrf.mxu3  ;;  %v655_v17 = vpop.f32.mrf.mxu1  ;;  %v3122_v60 = vld [vmem:[%s3321_s27 + $0xd9] sm:$0xff] }
 0x1b8   : > { %v656_v63 = vadd.f32 %v655_v17, %v4550_v21  ;;  %v3123_v21 = vld [vmem:[%s3321_s27 + $0xe1] sm:$0xff] }
 0x1b9   : > { %v1217_v39 = vadd.f32 %v1177_v52, %v938_v48 }
 0x1ba   : > { %v1458_v56 = vpop.f32.mrf.mxu0  ;;  %3023 = vmatmul.msk.f32.gmra.mxu1 %vm238_vm1, %v4545_v51 }
 0x1bb   : > { %v4179_v55 = vadd.f32 %v1455_v35, %v1217_v39  ;;  %3089 = vmatmul.msk.f32.gmra.mxu2 %vm238_vm1, %v3743_v44  ;;  %v4551_v44 = vld [vmem:[#allocation25_spill] sm:$0xff] }
 0x1bc   : > { %3155 = vmatmul.msk.f32.gmra.mxu3 %vm238_vm1, %v3121_v41 }
 0x1bd   : > { %3221 = vmatmul.msk.f32.gmra.mxu0 %vm238_vm1, %v3775_v2 }
 0x1be   : > { %v901_v40 = vpop.f32.mrf.mxu2 }
 0x1bf   : > { %v939_v33 = vadd.f32 %v901_v40, %v656_v63  ;;  %v1180_v43 = vpop.f32.mrf.mxu3  ;;  %v658_v47 = vpop.f32.mrf.mxu1 }
 0x1c0   : > { %v659_v51 = vadd.f32 %v658_v47, %v4551_v44 }
 0x1c1   : > { %v1218_v35 = vadd.f32 %v1180_v43, %v939_v33 }
 0x1c2   : > { %v1461_v25 = vpop.f32.mrf.mxu0  ;;  %3024 = vmatmul.msk.f32.gmra.mxu1 %vm238_vm1, %v4548_v31 }
 0x1c3   : > { %v4190_v48 = vadd.f32 %v1458_v56, %v1218_v35  ;;  %3090 = vmatmul.msk.f32.gmra.mxu2 %vm238_vm1, %v3763_v61  ;;  %v4552_v61 = vld [vmem:[#allocation28_spill] sm:$0xff] }
 0x1c4   : > { %3156 = vmatmul.msk.f32.gmra.mxu3 %vm238_vm1, %v3122_v60 }
 0x1c5   : > { %3222 = vmatmul.msk.f32.gmra.mxu0 %vm238_vm1, %v3792_v27 }
 0x1c6   : > { %v904_v52 = vpop.f32.mrf.mxu2 }
 0x1c7   : > { %v940_v17 = vadd.f32 %v904_v52, %v659_v51  ;;  %v1183_v39 = vpop.f32.mrf.mxu3  ;;  %v661_v41 = vpop.f32.mrf.mxu1 }
 0x1c8   : > { %v662_v31 = vadd.f32 %v661_v41, %v4552_v61  ;;  %v4554_v61 = vld [vmem:[#allocation31_spill] sm:$0xff] }
 0x1c9   : > { %v1219_v56 = vadd.f32 %v1183_v39, %v940_v17 }
 0x1ca   : > { %v1464_v63 = vpop.f32.mrf.mxu0  ;;  %3025 = vmatmul.msk.f32.gmra.mxu1 %vm238_vm1, %v3775_v2 }
 0x1cb   : > { %v4201_v40 = vadd.f32 %v1461_v25, %v1219_v56  ;;  %3091 = vmatmul.msk.f32.gmra.mxu2 %vm238_vm1, %v3778_v58  ;;  %v3124_v25 = vld [vmem:[%s3321_s27 + $0xf1] sm:$0xff]  ;;  %v4553_v58 = vld [vmem:[#allocation30_spill] sm:$0xff] }
 0x1cc   : > { %3157 = vmatmul.msk.f32.gmra.mxu3 %vm238_vm1, %v3123_v21  ;;  %v3125_v21 = vld [vmem:[%s3321_s27 + $0xf9] sm:$0xff] }
 0x1cd   : > { %3223 = vmatmul.msk.f32.gmra.mxu0 %vm238_vm1, %v3809_v62 }
 0x1ce   : > { %v907_v33 = vpop.f32.mrf.mxu2 }
 0x1cf   : > { %v941_v43 = vadd.f32 %v907_v33, %v662_v31  ;;  %v1186_v47 = vpop.f32.mrf.mxu3  ;;  %v1649_v35 = vpop.f32.mrf.mxu1 }
 0x1d0   : > { %v1745_v51 = vadd.f32 %v1649_v35, %v4553_v58  ;;  %v4555_v58 = vld [vmem:[#allocation32_spill] sm:$0xff] }
 0x1d1   : > { %v1220_v60 = vadd.f32 %v1186_v47, %v941_v43 }
 0x1d2   : > { %v2484_v44 = vpop.f32.mrf.mxu0  ;;  %3026 = vmatmul.msk.f32.gmra.mxu1 %vm238_vm1, %v3792_v27  ;;  %v4226_v27 = vld [vmem:[%s4451_s2] ss:$0 sm:$0xff] }
 0x1d3   : > { %v4212_v2 = vadd.f32 %v1464_v63, %v1220_v60  ;;  %3092 = vmatmul.msk.f32.gmra.mxu2 %vm238_vm1, %v3795_v6  ;;  %v3126_v60 = vld [vmem:[%s3321_s27 + $0x109] sm:$0xff] }
 0x1d4   : > { %3158 = vmatmul.msk.f32.gmra.mxu3 %vm238_vm1, %v3124_v25 }
 0x1d5   : > { %3224 = vmatmul.msk.f32.gmra.mxu0 %vm238_vm1, %v3826_v4 }
 0x1d6   : > { %v1928_v52 = vpop.f32.mrf.mxu2 }
 0x1d7   : > { %v2024_v17 = vadd.f32 %v1928_v52, %v1745_v51  ;;  %v2206_v39 = vpop.f32.mrf.mxu3  ;;  %v1652_v41 = vpop.f32.mrf.mxu1 }
 0x1d8   : > { %v1746_v31 = vadd.f32 %v1652_v41, %v4554_v61 }
 0x1d9   : > { %v2302_v56 = vadd.f32 %v2206_v39, %v2024_v17 }
 0x1da   : > { %v2487_v6 = vpop.f32.mrf.mxu0  ;;  %3027 = vmatmul.msk.f32.gmra.mxu1 %vm238_vm1, %v3809_v62 }
 0x1db   : > { %v2580_v63 = vadd.f32 %v2484_v44, %v2302_v56  ;;  %3093 = vmatmul.msk.f32.gmra.mxu2 %vm238_vm1, %v3812_v13 }
 0x1dc   : > { %3159 = vmatmul.msk.f32.gmra.mxu3 %vm238_vm1, %v3125_v21 }
 0x1dd   : > { %3225 = vmatmul.msk.f32.gmra.mxu0 %vm238_vm1, %v3843_v16  ;;  %v2616_v33 = vadd.f32 %v4226_v27, %v2580_v63  ;;  %v4556_v63 = vld [vmem:[#allocation33_spill] sm:$0xff] }
 0x1de   : > { %v1931_v43 = vpop.f32.mrf.mxu2 }
 0x1df   : > { %2648 = vst [vmem:[%s4236_s16] sm:$0xff] %v2616_v33  ;;  %v2025_v62 = vadd.f32 %v1931_v43, %v1746_v31  ;;  %v2209_v13 = vpop.f32.mrf.mxu3  ;;  %v1655_v47 = vpop.f32.mrf.mxu1 }
 0x1e0   : > { %v1747_v51 = vadd.f32 %v1655_v47, %v4555_v58 }
 0x1e1   : > { %v2303_v35 = vadd.f32 %v2209_v13, %v2025_v62 }
 0x1e2   : > { %v2490_v25 = vpop.f32.mrf.mxu0  ;;  %3028 = vmatmul.msk.f32.gmra.mxu1 %vm238_vm1, %v3826_v4  ;;  %v3127_v4 = vld [vmem:[%s3321_s27 + $0x111] sm:$0xff] }
 0x1e3   : > { %v2581_v44 = vadd.f32 %v2487_v6, %v2303_v35  ;;  %3094 = vmatmul.msk.f32.gmra.mxu2 %vm238_vm1, %v3829_v14 }
 0x1e4   : > { %3160 = vmatmul.msk.f32.gmra.mxu3 %vm238_vm1, %v3126_v60  ;;  %v4557_v60 = vld [vmem:[#allocation34_spill] sm:$0xff] }
 0x1e5   : > { %3226 = vmatmul.msk.f32.gmra.mxu0 %vm238_vm1, %v3860_v32  ;;  %v2617_v52 = vadd.f32 %v4226_v27, %v2581_v44 }
 0x1e6   : > { %v1934_v17 = vpop.f32.mrf.mxu2 }
 0x1e7   : > { %2649 = vst [vmem:[%s4236_s16 + $0x8] sm:$0xff] %v2617_v52  ;;  %v2026_v39 = vadd.f32 %v1934_v17, %v1747_v51  ;;  %v2212_v41 = vpop.f32.mrf.mxu3  ;;  %v1658_v56 = vpop.f32.mrf.mxu1 }
 0x1e8   : > { %v1748_v61 = vadd.f32 %v1658_v56, %v4556_v63  ;;  %v4558_v56 = vld [vmem:[#allocation35_spill] sm:$0xff] }
 0x1e9   : > { %v2304_v21 = vadd.f32 %v2212_v41, %v2026_v39 }
 0x1ea   : > { %v2493_v6 = vpop.f32.mrf.mxu0  ;;  %3029 = vmatmul.msk.f32.gmra.mxu1 %vm238_vm1, %v3843_v16  ;;  %v3128_v16 = vld [vmem:[%s3321_s27 + $0x121] sm:$0xff] }
 0x1eb   : > { %v2582_v14 = vadd.f32 %v2490_v25, %v2304_v21  ;;  %3095 = vmatmul.msk.f32.gmra.mxu2 %vm238_vm1, %v3846_v18 }
 0x1ec   : > { %3161 = vmatmul.msk.f32.gmra.mxu3 %vm238_vm1, %v3127_v4 }
 0x1ed   : > { %3227 = vmatmul.msk.f32.gmra.mxu0 %vm238_vm1, %v3877_v45  ;;  %v2618_v31 = vadd.f32 %v4226_v27, %v2582_v14 }
 0x1ee   : > { %v1937_v33 = vpop.f32.mrf.mxu2 }
 0x1ef   : > { %2650 = vst [vmem:[%s4236_s16 + $0x10] sm:$0xff] %v2618_v31  ;;  %v2027_v43 = vadd.f32 %v1937_v33, %v1748_v61  ;;  %v2215_v62 = vpop.f32.mrf.mxu3  ;;  %v1661_v13 = vpop.f32.mrf.mxu1 }
 0x1f0   : > { %v1749_v25 = vadd.f32 %v1661_v13, %v4557_v60 }
 0x1f1   : > { %v2305_v47 = vadd.f32 %v2215_v62, %v2027_v43  ;;  %v4559_v43 = vld [vmem:[#allocation36_spill] sm:$0xff] }
 0x1f2   : > { %v2496_v35 = vpop.f32.mrf.mxu0  ;;  %3030 = vmatmul.msk.f32.gmra.mxu1 %vm238_vm1, %v3860_v32  ;;  %v3129_v32 = vld [vmem:[%s3321_s27 + $0x129] sm:$0xff] }
 0x1f3   : > { %v2583_v18 = vadd.f32 %v2493_v6, %v2305_v47  ;;  %3096 = vmatmul.msk.f32.gmra.mxu2 %vm238_vm1, %v3863_v22 }
 0x1f4   : > { %3162 = vmatmul.msk.f32.gmra.mxu3 %vm238_vm1, %v3128_v16 }
 0x1f5   : > { %3228 = vmatmul.msk.f32.gmra.mxu0 %vm238_vm1, %v3894_v0  ;;  %v2619_v44 = vadd.f32 %v4226_v27, %v2583_v18 }
 0x1f6   : > { %v1940_v58 = vpop.f32.mrf.mxu2 }
 0x1f7   : > { %2651 = vst [vmem:[%s4236_s16 + $0x18] sm:$0xff] %v2619_v44  ;;  %v2028_v51 = vadd.f32 %v1940_v58, %v1749_v25  ;;  %v2218_v52 = vpop.f32.mrf.mxu3  ;;  %v1664_v17 = vpop.f32.mrf.mxu1  ;;  %v4560_v44 = vld [vmem:[#allocation37_spill] sm:$0xff] }
 0x1f8   : > { %v1750_v21 = vadd.f32 %v1664_v17, %v4558_v56  ;;  %v4561_v56 = vld [vmem:[#allocation38_spill] sm:$0xff] }
 0x1f9   : > { %v2306_v39 = vadd.f32 %v2218_v52, %v2028_v51 }
 0x1fa   : > { %v2499_v41 = vpop.f32.mrf.mxu0  ;;  %3031 = vmatmul.msk.f32.gmra.mxu1 %vm238_vm1, %v3877_v45  ;;  %v3130_v45 = vld [vmem:[%s3321_s27 + $0x139] sm:$0xff] }
 0x1fb   : > { %v2584_v22 = vadd.f32 %v2496_v35, %v2306_v39  ;;  %3097 = vmatmul.msk.f32.gmra.mxu2 %vm238_vm1, %v3880_v29 }
 0x1fc   : > { %3163 = vmatmul.msk.f32.gmra.mxu3 %vm238_vm1, %v3129_v32 }
 0x1fd   : > { %3229 = vmatmul.msk.f32.gmra.mxu0 %vm238_vm1, %v3911_v26  ;;  %v2620_v4 = vadd.f32 %v4226_v27, %v2584_v22 }
 0x1fe   : > { %v1943_v6 = vpop.f32.mrf.mxu2 }
 0x1ff   : > { %2652 = vst [vmem:[%s4236_s16 + $0x20] sm:$0xff] %v2620_v4  ;;  %v2029_v14 = vadd.f32 %v1943_v6, %v1750_v21  ;;  %v2221_v63 = vpop.f32.mrf.mxu3  ;;  %v1667_v61 = vpop.f32.mrf.mxu1 }
 0x200   : > { %v1751_v62 = vadd.f32 %v1667_v61, %v4559_v43 }
 0x201   : > { %v2307_v31 = vadd.f32 %v2221_v63, %v2029_v14 }
 0x202   : > { %v2502_v33 = vpop.f32.mrf.mxu0  ;;  %3032 = vmatmul.msk.f32.gmra.mxu1 %vm238_vm1, %v3894_v0  ;;  %v3131_v0 = vld [vmem:[%s3321_s27 + $0x141] sm:$0xff] }
 0x203   : > { %v2585_v29 = vadd.f32 %v2499_v41, %v2307_v31  ;;  %3098 = vmatmul.msk.f32.gmra.mxu2 %vm238_vm1, %v3897_v34 }
 0x204   : > { %3164 = vmatmul.msk.f32.gmra.mxu3 %vm238_vm1, %v3130_v45 }
 0x205   : > { %3230 = vmatmul.msk.f32.gmra.mxu0 %vm238_vm1, %v3928_v12  ;;  %v2621_v13 = vadd.f32 %v4226_v27, %v2585_v29  ;;  %v4563_v29 = vld [vmem:[#allocation39_spill] sm:$0xff] }
 0x206   : > { %v1946_v47 = vpop.f32.mrf.mxu2 }
 0x207   : > { %2653 = vst [vmem:[%s4236_s16 + $0x28] sm:$0xff] %v2621_v13  ;;  %v2030_v16 = vadd.f32 %v1946_v47, %v1751_v62  ;;  %v2224_v35 = vpop.f32.mrf.mxu3  ;;  %v1670_v18 = vpop.f32.mrf.mxu1 }
 0x208   : > { %v1752_v58 = vadd.f32 %v1670_v18, %v4560_v44 }
 0x209   : > { %v2308_v60 = vadd.f32 %v2224_v35, %v2030_v16 }
 0x20a   : > { %v2505_v25 = vpop.f32.mrf.mxu0  ;;  %3033 = vmatmul.msk.f32.gmra.mxu1 %vm238_vm1, %v3911_v26  ;;  %v3132_v26 = vld [vmem:[%s3321_s27 + $0x151] sm:$0xff] }
 0x20b   : > { %v2586_v34 = vadd.f32 %v2502_v33, %v2308_v60  ;;  %3099 = vmatmul.msk.f32.gmra.mxu2 %vm238_vm1, %v3914_v38  ;;  %v4562_v33 = vld [vmem:[#allocation42_spill] sm:$0xff] }
 0x20c   : > { %3165 = vmatmul.msk.f32.gmra.mxu3 %vm238_vm1, %v3131_v0  ;;  %v4564_v0 = vld [vmem:[#allocation44_spill] sm:$0xff] }
 0x20d   : > { %3231 = vmatmul.msk.f32.gmra.mxu0 %vm238_vm1, %v3945_v59  ;;  %v2622_v51 = vadd.f32 %v4226_v27, %v2586_v34 }
 0x20e   : > { %v1949_v52 = vpop.f32.mrf.mxu2 }
 0x20f   : > { %2654 = vst [vmem:[%s4236_s16 + $0x30] sm:$0xff] %v2622_v51  ;;  %v2031_v17 = vadd.f32 %v1949_v52, %v1752_v58  ;;  %v2227_v39 = vpop.f32.mrf.mxu3  ;;  %v1673_v32 = vpop.f32.mrf.mxu1 }
 0x210   : > { %v1753_v21 = vadd.f32 %v1673_v32, %v4561_v56 }
 0x211   : > { %v2309_v41 = vadd.f32 %v2227_v39, %v2031_v17 }
 0x212   : > { %v2508_v22 = vpop.f32.mrf.mxu0  ;;  %3034 = vmatmul.msk.f32.gmra.mxu1 %vm238_vm1, %v3928_v12  ;;  %v3133_v12 = vld [vmem:[%s3321_s27 + $0x159] sm:$0xff] }
 0x213   : > { %v2587_v38 = vadd.f32 %v2505_v25, %v2309_v41  ;;  %3100 = vmatmul.msk.f32.gmra.mxu2 %vm238_vm1, %v3931_v7  ;;  %v4565_v25 = vld [vmem:[#allocation40_spill] sm:$0xff]  ;;  %v4566_v41 = vld [vmem:[#allocation41_spill] sm:$0xff] }
 0x214   : > { %3166 = vmatmul.msk.f32.gmra.mxu3 %vm238_vm1, %v3132_v26 }
 0x215   : > { %3232 = vmatmul.msk.f32.gmra.mxu0 %vm238_vm1, %v3962_v1  ;;  %v2623_v4 = vadd.f32 %v4226_v27, %v2587_v38 }
 0x216   : > { %v1952_v6 = vpop.f32.mrf.mxu2 }
 0x217   : > { %2655 = vst [vmem:[%s4236_s16 + $0x38] sm:$0xff] %v2623_v4  ;;  %v2032_v14 = vadd.f32 %v1952_v6, %v1753_v21  ;;  %v2230_v63 = vpop.f32.mrf.mxu3  ;;  %v1676_v61 = vpop.f32.mrf.mxu1 }
 0x218   : > { %v1754_v43 = vadd.f32 %v1676_v61, %v4563_v29  ;;  %v4567_v61 = vld [vmem:[#allocation43_spill] sm:$0xff] }
 0x219   : > { %v2310_v31 = vadd.f32 %v2230_v63, %v2032_v14  ;;  %v3202_v63 = vld [vmem:[%s3321_s27 + $0x182] sm:$0xff] }
 0x21a   : > { %v2511_v45 = vpop.f32.mrf.mxu0  ;;  %3035 = vmatmul.msk.f32.gmra.mxu1 %vm238_vm1, %v3945_v59  ;;  %v3134_v59 = vld [vmem:[%s3321_s27 + $0x169] sm:$0xff] }
 0x21b   : > { %v2588_v7 = vadd.f32 %v2508_v22, %v2310_v31  ;;  %3101 = vmatmul.msk.f32.gmra.mxu2 %vm238_vm1, %v3948_v11 }
 0x21c   : > { %3167 = vmatmul.msk.f32.gmra.mxu3 %vm238_vm1, %v3133_v12 }
 0x21d   : > { %3233 = vmatmul.msk.f32.gmra.mxu0 %vm238_vm1, %v4562_v33  ;;  %v2624_v62 = vadd.f32 %v4226_v27, %v2588_v7 }
 0x21e   : > { %v1955_v13 = vpop.f32.mrf.mxu2 }
 0x21f   : > { %2656 = vst [vmem:[%s4236_s16 + $0x40] sm:$0xff] %v2624_v62  ;;  %v2033_v47 = vadd.f32 %v1955_v13, %v1754_v43  ;;  %v2233_v16 = vpop.f32.mrf.mxu3  ;;  %v1679_v35 = vpop.f32.mrf.mxu1 }
 0x220   : > { %v1755_v34 = vadd.f32 %v1679_v35, %v4565_v25  ;;  %v3204_v25 = vld [vmem:[%s3321_s27 + $0x19a] sm:$0xff] }
 0x221   : > { %v2311_v18 = vadd.f32 %v2233_v16, %v2033_v47 }
 0x222   : > { %v2514_v60 = vpop.f32.mrf.mxu0  ;;  %3036 = vmatmul.msk.f32.gmra.mxu1 %vm238_vm1, %v3962_v1  ;;  %v3135_v1 = vld [vmem:[%s3321_s27 + $0x171] sm:$0xff] }
 0x223   : > { %v2589_v11 = vadd.f32 %v2511_v45, %v2311_v18  ;;  %3102 = vmatmul.msk.f32.gmra.mxu2 %vm238_vm1, %v3965_v15 }
 0x224   : > { %3168 = vmatmul.msk.f32.gmra.mxu3 %vm238_vm1, %v3134_v59 }
 0x225   : > { %3234 = vmatmul.msk.f32.gmra.mxu0 %vm238_vm1, %v4564_v0  ;;  %v2625_v44 = vadd.f32 %v4226_v27, %v2589_v11  ;;  %v3072_v11 = vld [vmem:[%s3321_s27 + $0x198] sm:$0xff] }
 0x226   : > { %v1958_v58 = vpop.f32.mrf.mxu2 }
 0x227   : > { %2657 = vst [vmem:[%s4236_s16 + $0x48] sm:$0xff] %v2625_v44  ;;  %v2034_v51 = vadd.f32 %v1958_v58, %v1755_v34  ;;  %v2236_v52 = vpop.f32.mrf.mxu3  ;;  %v1682_v17 = vpop.f32.mrf.mxu1 }
 0x228   : > { %v1756_v26 = vadd.f32 %v1682_v17, %v4566_v41  ;;  %v3205_v41 = vld [vmem:[%s3321_s27 + $0x1a2] sm:$0xff] }
 0x229   : > { %v2312_v39 = vadd.f32 %v2236_v52, %v2034_v51 }
 0x22a   : > { %v2517_v32 = vpop.f32.mrf.mxu0  ;;  %3037 = vmatmul.msk.f32.gmra.mxu1 %vm238_vm1, %v4562_v33 }
 0x22b   : > { %v2590_v15 = vadd.f32 %v2514_v60, %v2312_v39  ;;  %3103 = vmatmul.msk.f32.gmra.mxu2 %vm238_vm1, %v3982_v19  ;;  %v3073_v39 = vld [vmem:[%s3321_s27 + $0x1a0] sm:$0xff] }
 0x22c   : > { %3169 = vmatmul.msk.f32.gmra.mxu3 %vm238_vm1, %v3135_v1 }
 0x22d   : > { %3235 = vmatmul.msk.f32.gmra.mxu0 %vm238_vm1, %v4016_v37  ;;  %v2626_v22 = vadd.f32 %v4226_v27, %v2590_v15 }
 0x22e   : > { %v1961_v38 = vpop.f32.mrf.mxu2 }
 0x22f   : > { %2658 = vst [vmem:[%s4236_s16 + $0x50] sm:$0xff] %v2626_v22  ;;  %v2035_v56 = vadd.f32 %v1961_v38, %v1756_v26  ;;  %v2239_v21 = vpop.f32.mrf.mxu3  ;;  %v1685_v4 = vpop.f32.mrf.mxu1 }
 0x230   : > { %v1757_v31 = vadd.f32 %v1685_v4, %v4567_v61 }
 0x231   : > { %v2313_v6 = vadd.f32 %v2239_v21, %v2035_v56 }
 0x232   : > { %v2520_v14 = vpop.f32.mrf.mxu0  ;;  %3038 = vmatmul.msk.f32.gmra.mxu1 %vm238_vm1, %v4564_v0  ;;  %v3138_v0 = vld [vmem:[%s3321_s27 + $0x199] sm:$0xff] }
 0x233   : > { %v2591_v19 = vadd.f32 %v2517_v32, %v2313_v6  ;;  %3104 = vmatmul.msk.f32.gmra.mxu2 %vm238_vm1, %v3999_v23  ;;  %v3203_v23 = vld [vmem:[%s3321_s27 + $0x18a] sm:$0xff]  ;;  %v3139_v32 = vld [vmem:[%s3321_s27 + $0x1a1] sm:$0xff] }
 0x234   : > { %3170 = vmatmul.msk.f32.gmra.mxu3 %vm238_vm1, %v4002_v28  ;;  %v4568_v28 = vld [vmem:[#allocation45_spill] sm:$0xff] }
 0x235   : > { %3236 = vmatmul.msk.f32.gmra.mxu0 %vm238_vm1, %v3202_v63  ;;  %v2627_v12 = vadd.f32 %v4226_v27, %v2591_v19 }
 0x236   : > { %v1964_v45 = vpop.f32.mrf.mxu2 }
 0x237   : > { %2659 = vst [vmem:[%s4236_s16 + $0x58] sm:$0xff] %v2627_v12  ;;  %v2036_v7 = vadd.f32 %v1964_v45, %v1757_v31  ;;  %v2242_v33 = vpop.f32.mrf.mxu3  ;;  %v1688_v29 = vpop.f32.mrf.mxu1 }
 0x238   : > { %v1758_v47 = vadd.f32 %v1688_v29, %v4568_v28 }
 0x239   : > { %v2314_v43 = vadd.f32 %v2242_v33, %v2036_v7 }
 0x23a   : > { %v2523_v62 = vpop.f32.mrf.mxu0  ;;  %3039 = vmatmul.msk.f32.gmra.mxu1 %vm238_vm1, %v4016_v37 }
 0x23b   : > { %v2592_v13 = vadd.f32 %v2520_v14, %v2314_v43  ;;  %3105 = vmatmul.msk.f32.gmra.mxu2 %vm238_vm1, %v4019_v30 }
 0x23c   : > { %3171 = vmatmul.msk.f32.gmra.mxu3 %vm238_vm1, %v4022_v9 }
 0x23d   : > { %3237 = vmatmul.msk.f32.gmra.mxu0 %vm238_vm1, %v3203_v23  ;;  %v2628_v16 = vadd.f32 %v4226_v27, %v2592_v13 }
 0x23e   : > { %v1967_v35 = vpop.f32.mrf.mxu2 }
 0x23f   : > { %2660 = vst [vmem:[%s4236_s16 + $0x60] sm:$0xff] %v2628_v16  ;;  %v2037_v18 = vadd.f32 %v1967_v35, %v1758_v47  ;;  %v2245_v59 = vpop.f32.mrf.mxu3  ;;  %v1691_v60 = vpop.f32.mrf.mxu1 }
 0x240   : > { %v1759_v34 = vadd.f32 %v1691_v60, %v4024_v8 }
 0x241   : > { %v2315_v37 = vadd.f32 %v2245_v59, %v2037_v18 }
 0x242   : > { %v2526_v30 = vpop.f32.mrf.mxu0  ;;  %3040 = vmatmul.msk.f32.gmra.mxu1 %vm238_vm1, %v3202_v63 }
 0x243   : > { %v2593_v9 = vadd.f32 %v2523_v62, %v2315_v37  ;;  %3106 = vmatmul.msk.f32.gmra.mxu2 %vm238_vm1, %v3072_v11 }
 0x244   : > { %3172 = vmatmul.msk.f32.gmra.mxu3 %vm238_vm1, %v3138_v0 }
 0x245   : > { %3238 = vmatmul.msk.f32.gmra.mxu0 %vm238_vm1, %v3204_v25  ;;  %v2629_v44 = vadd.f32 %v4226_v27, %v2593_v9 }
 0x246   : > { %v1970_v58 = vpop.f32.mrf.mxu2 }
 0x247   : > { %2661 = vst [vmem:[%s4236_s16 + $0x68] sm:$0xff] %v2629_v44  ;;  %v2038_v51 = vadd.f32 %v1970_v58, %v1759_v34  ;;  %v2248_v52 = vpop.f32.mrf.mxu3  ;;  %v1694_v17 = vpop.f32.mrf.mxu1 }
 0x248   : > { %v1760_v8 = vadd.f32 %v1694_v17, %v4035_v3 }
 0x249   : > { %v2316_v1 = vadd.f32 %v2248_v52, %v2038_v51 }
 0x24a   : > { %v2529_v15 = vpop.f32.mrf.mxu0  ;;  %3041 = vmatmul.msk.f32.gmra.mxu1 %vm238_vm1, %v3203_v23 }
 0x24b   : > { %v2594_v26 = vadd.f32 %v2526_v30, %v2316_v1  ;;  %3107 = vmatmul.msk.f32.gmra.mxu2 %vm238_vm1, %v3073_v39 }
 0x24c   : > { %3173 = vmatmul.msk.f32.gmra.mxu3 %vm238_vm1, %v3139_v32 }
 0x24d   : > { %3239 = vmatmul.msk.f32.gmra.mxu0 %vm238_vm1, %v3205_v41  ;;  %v2630_v22 = vadd.f32 %v4226_v27, %v2594_v26 }
 0x24e   : > { %v1973_v38 = vpop.f32.mrf.mxu2 }
 0x24f   : > { %2662 = vst [vmem:[%s4236_s16 + $0x70] sm:$0xff] %v2630_v22  ;;  %v2039_v56 = vadd.f32 %v1973_v38, %v1760_v8  ;;  %v2251_v21 = vpop.f32.mrf.mxu3  ;;  %v1697_v4 = vpop.f32.mrf.mxu1 }
 0x250   : > { %v1761_v19 = vadd.f32 %v1697_v4, %v4046_v10 }
 0x251   : > { %v2317_v6 = vadd.f32 %v2251_v21, %v2039_v56 }
 0x252   : > { %v2532_v14 = vpop.f32.mrf.mxu0 }
 0x253   : > { %v2595_v63 = vadd.f32 %v2529_v15, %v2317_v6 }
 0x255   : > { %v2631_v61 = vadd.f32 %v4226_v27, %v2595_v63 }
 0x256   : > { %v1976_v31 = vpop.f32.mrf.mxu2 }
 0x257   : > { %2663 = vst [vmem:[%s4236_s16 + $0x78] sm:$0xff] %v2631_v61  ;;  %v2040_v12 = vadd.f32 %v1976_v31, %v1761_v19  ;;  %v2254_v45 = vpop.f32.mrf.mxu3  ;;  %v1700_v3 = vpop.f32.mrf.mxu1 }
 0x258   : > { %v1762_v43 = vadd.f32 %v1700_v3, %v4057_v42 }
 0x259   : > { %v2318_v7 = vadd.f32 %v2254_v45, %v2040_v12 }
 0x25a   : > { %v2535_v33 = vpop.f32.mrf.mxu0 }
 0x25b   : > { %v2596_v29 = vadd.f32 %v2532_v14, %v2318_v7 }
 0x25d   : > { %v2632_v62 = vadd.f32 %v4226_v27, %v2596_v29 }
 0x25e   : > { %v1979_v23 = vpop.f32.mrf.mxu2 }
 0x25f   : > { %2664 = vst [vmem:[%s4236_s16 + $0x80] sm:$0xff] %v2632_v62  ;;  %v2041_v13 = vadd.f32 %v1979_v23, %v1762_v43  ;;  %v2257_v28 = vpop.f32.mrf.mxu3  ;;  %v1703_v10 = vpop.f32.mrf.mxu1 }
 0x260   : > { %v1763_v18 = vadd.f32 %v1703_v10, %v4068_v46 }
 0x261   : > { %v2319_v47 = vadd.f32 %v2257_v28, %v2041_v13 }
 0x262   : > { %v2538_v16 = vpop.f32.mrf.mxu0 }
 0x263   : > { %v2597_v35 = vadd.f32 %v2535_v33, %v2319_v47 }
 0x265   : > { %v2633_v59 = vadd.f32 %v4226_v27, %v2597_v35 }
 0x266   : > { %v1982_v60 = vpop.f32.mrf.mxu2 }
 0x267   : > { %2665 = vst [vmem:[%s4236_s16 + $0x88] sm:$0xff] %v2633_v59  ;;  %v2042_v11 = vadd.f32 %v1982_v60, %v1763_v18  ;;  %v2260_v37 = vpop.f32.mrf.mxu3  ;;  %v1706_v42 = vpop.f32.mrf.mxu1 }
 0x268   : > { %v1764_v9 = vadd.f32 %v1706_v42, %v4080_v53 }
 0x269   : > { %v2320_v0 = vadd.f32 %v2260_v37, %v2042_v11 }
 0x26a   : > { %v2541_v30 = vpop.f32.mrf.mxu0 }
 0x26b   : > { %v2598_v25 = vadd.f32 %v2538_v16, %v2320_v0 }
 0x26d   : > { %v2634_v34 = vadd.f32 %v4226_v27, %v2598_v25 }
 0x26e   : > { %v1985_v44 = vpop.f32.mrf.mxu2 }
 0x26f   : > { %2666 = vst [vmem:[%s4236_s16 + $0x90] sm:$0xff] %v2634_v34  ;;  %v2043_v58 = vadd.f32 %v1985_v44, %v1764_v9  ;;  %v2263_v51 = vpop.f32.mrf.mxu3  ;;  %v1709_v46 = vpop.f32.mrf.mxu1 }
 0x270   : > { %v1765_v1 = vadd.f32 %v1709_v46, %v4091_v50 }
 0x271   : > { %v2321_v52 = vadd.f32 %v2263_v51, %v2043_v58 }
 0x272   : > { %v2544_v17 = vpop.f32.mrf.mxu0 }
 0x273   : > { %v2599_v39 = vadd.f32 %v2541_v30, %v2321_v52 }
 0x275   : > { %v2635_v32 = vadd.f32 %v4226_v27, %v2599_v39 }
 0x276   : > { %v1988_v15 = vpop.f32.mrf.mxu2 }
 0x277   : > { %2667 = vst [vmem:[%s4236_s16 + $0x98] sm:$0xff] %v2635_v32  ;;  %v2044_v41 = vadd.f32 %v1988_v15, %v1765_v1  ;;  %v2266_v26 = vpop.f32.mrf.mxu3  ;;  %v1712_v53 = vpop.f32.mrf.mxu1 }
 0x278   : > { %v1766_v56 = vadd.f32 %v1712_v53, %v4102_v24 }
 0x279   : > { %v2322_v8 = vadd.f32 %v2266_v26, %v2044_v41 }
 0x27a   : > { %v2547_v22 = vpop.f32.mrf.mxu0 }
 0x27b   : > { %v2600_v38 = vadd.f32 %v2544_v17, %v2322_v8 }
 0x27d   : > { %v2636_v21 = vadd.f32 %v4226_v27, %v2600_v38 }
 0x27e   : > { %v1991_v4 = vpop.f32.mrf.mxu2 }
 0x27f   : > { %2668 = vst [vmem:[%s4236_s16 + $0xa0] sm:$0xff] %v2636_v21  ;;  %v2045_v6 = vadd.f32 %v1991_v4, %v1766_v56  ;;  %v2269_v14 = vpop.f32.mrf.mxu3  ;;  %v1715_v50 = vpop.f32.mrf.mxu1 }
 0x280   : > { %v1767_v31 = vadd.f32 %v1715_v50, %v4113_v49 }
 0x281   : > { %v2323_v63 = vadd.f32 %v2269_v14, %v2045_v6 }
 0x282   : > { %v2550_v19 = vpop.f32.mrf.mxu0 }
 0x283   : > { %v2601_v61 = vadd.f32 %v2547_v22, %v2323_v63 }
 0x285   : > { %v2637_v12 = vadd.f32 %v4226_v27, %v2601_v61 }
 0x286   : > { %v1994_v45 = vpop.f32.mrf.mxu2 }
 0x287   : > { %2669 = vst [vmem:[%s4236_s16 + $0xa8] sm:$0xff] %v2637_v12  ;;  %v2046_v3 = vadd.f32 %v1994_v45, %v1767_v31  ;;  %v2272_v7 = vpop.f32.mrf.mxu3  ;;  %v1718_v24 = vpop.f32.mrf.mxu1 }
 0x288   : > { %v1768_v62 = vadd.f32 %v1718_v24, %v4124_v57 }
 0x289   : > { %v2324_v33 = vadd.f32 %v2272_v7, %v2046_v3 }
 0x28a   : > { %v2553_v29 = vpop.f32.mrf.mxu0 }
 0x28b   : > { %v2602_v43 = vadd.f32 %v2550_v19, %v2324_v33 }
 0x28d   : > { %v2638_v23 = vadd.f32 %v4226_v27, %v2602_v43 }
 0x28e   : > { %v1997_v13 = vpop.f32.mrf.mxu2 }
 0x28f   : > { %2670 = vst [vmem:[%s4236_s16 + $0xb0] sm:$0xff] %v2638_v23  ;;  %v2047_v28 = vadd.f32 %v1997_v13, %v1768_v62  ;;  %v2275_v10 = vpop.f32.mrf.mxu3  ;;  %v1721_v49 = vpop.f32.mrf.mxu1 }
 0x290   : > { %v1769_v18 = vadd.f32 %v1721_v49, %v4135_v5 }
 0x291   : > { %v2325_v47 = vadd.f32 %v2275_v10, %v2047_v28 }
 0x292   : > { %v2556_v16 = vpop.f32.mrf.mxu0 }
 0x293   : > { %v2603_v35 = vadd.f32 %v2553_v29, %v2325_v47 }
 0x295   : > { %v2639_v59 = vadd.f32 %v4226_v27, %v2603_v35 }
 0x296   : > { %v2000_v60 = vpop.f32.mrf.mxu2 }
 0x297   : > { %2671 = vst [vmem:[%s4236_s16 + $0xb8] sm:$0xff] %v2639_v59  ;;  %v2048_v11 = vadd.f32 %v2000_v60, %v1769_v18  ;;  %v2278_v37 = vpop.f32.mrf.mxu3  ;;  %v1724_v57 = vpop.f32.mrf.mxu1 }
 0x298   : > { %v1770_v25 = vadd.f32 %v1724_v57, %v4146_v54 }
 0x299   : > { %v2326_v42 = vadd.f32 %v2278_v37, %v2048_v11 }
 0x29a   : > { %v2559_v0 = vpop.f32.mrf.mxu0 }
 0x29b   : > { %v2604_v30 = vadd.f32 %v2556_v16, %v2326_v42 }
 0x29d   : > { %v2640_v9 = vadd.f32 %v4226_v27, %v2604_v30 }
 0x29e   : > { %v2003_v34 = vpop.f32.mrf.mxu2 }
 0x29f   : > { %2672 = vst [vmem:[%s4236_s16 + $0xc0] sm:$0xff] %v2640_v9  ;;  %v2049_v44 = vadd.f32 %v2003_v34, %v1770_v25  ;;  %v2281_v58 = vpop.f32.mrf.mxu3  ;;  %v1727_v5 = vpop.f32.mrf.mxu1 }
 0x2a0   : > { %v1771_v17 = vadd.f32 %v1727_v5, %v4157_v36 }
 0x2a1   : > { %v2327_v51 = vadd.f32 %v2281_v58, %v2049_v44 }
 0x2a2   : > { %v2562_v46 = vpop.f32.mrf.mxu0 }
 0x2a3   : > { %v2605_v52 = vadd.f32 %v2559_v0, %v2327_v51 }
 0x2a5   : > { %v2641_v39 = vadd.f32 %v4226_v27, %v2605_v52 }
 0x2a6   : > { %v2006_v1 = vpop.f32.mrf.mxu2 }
 0x2a7   : > { %2673 = vst [vmem:[%s4236_s16 + $0xc8] sm:$0xff] %v2641_v39  ;;  %v2050_v32 = vadd.f32 %v2006_v1, %v1771_v17  ;;  %v2284_v15 = vpop.f32.mrf.mxu3  ;;  %v1730_v54 = vpop.f32.mrf.mxu1 }
 0x2a8   : > { %v1772_v8 = vadd.f32 %v1730_v54, %v4168_v20 }
 0x2a9   : > { %v2328_v41 = vadd.f32 %v2284_v15, %v2050_v32 }
 0x2aa   : > { %v2565_v26 = vpop.f32.mrf.mxu0 }
 0x2ab   : > { %v2606_v53 = vadd.f32 %v2562_v46, %v2328_v41 }
 0x2ad   : > { %v2642_v22 = vadd.f32 %v4226_v27, %v2606_v53 }
 0x2ae   : > { %v2009_v38 = vpop.f32.mrf.mxu2 }
 0x2af   : > { %2674 = vst [vmem:[%s4236_s16 + $0xd0] sm:$0xff] %v2642_v22  ;;  %v2051_v56 = vadd.f32 %v2009_v38, %v1772_v8  ;;  %v2287_v21 = vpop.f32.mrf.mxu3  ;;  %v1733_v36 = vpop.f32.mrf.mxu1 }
 0x2b0   : > { %v1773_v50 = vadd.f32 %v1733_v36, %v4179_v55 }
 0x2b1   : > { %v2329_v4 = vadd.f32 %v2287_v21, %v2051_v56 }
 0x2b2   : > { %v2568_v6 = vpop.f32.mrf.mxu0 }
 0x2b3   : > { %v2607_v14 = vadd.f32 %v2565_v26, %v2329_v4 }
 0x2b5   : > { %v2643_v63 = vadd.f32 %v4226_v27, %v2607_v14 }
 0x2b6   : > { %v2012_v19 = vpop.f32.mrf.mxu2 }
 0x2b7   : > { %2675 = vst [vmem:[%s4236_s16 + $0xd8] sm:$0xff] %v2643_v63  ;;  %v2052_v61 = vadd.f32 %v2012_v19, %v1773_v50  ;;  %v2290_v31 = vpop.f32.mrf.mxu3  ;;  %v1736_v20 = vpop.f32.mrf.mxu1 }
 0x2b8   : > { %v1774_v7 = vadd.f32 %v1736_v20, %v4190_v48 }
 0x2b9   : > { %v2330_v12 = vadd.f32 %v2290_v31, %v2052_v61 }
 0x2ba   : > { %v2571_v3 = vpop.f32.mrf.mxu0 }
 0x2bb   : > { %v2608_v45 = vadd.f32 %v2568_v6, %v2330_v12 }
 0x2bd   : > { %v2644_v24 = vadd.f32 %v4226_v27, %v2608_v45 }
 0x2be   : > { %v2015_v33 = vpop.f32.mrf.mxu2 }
 0x2bf   : > { %2676 = vst [vmem:[%s4236_s16 + $0xe0] sm:$0xff] %v2644_v24  ;;  %v2053_v29 = vadd.f32 %v2015_v33, %v1774_v7  ;;  %v2293_v43 = vpop.f32.mrf.mxu3  ;;  %v1739_v55 = vpop.f32.mrf.mxu1 }
 0x2c0   : > { %v1775_v13 = vadd.f32 %v1739_v55, %v4201_v40 }
 0x2c1   : > { %v2331_v62 = vadd.f32 %v2293_v43, %v2053_v29 }
 0x2c2   : > { %v2574_v49 = vpop.f32.mrf.mxu0 }
 0x2c3   : > { %v2609_v23 = vadd.f32 %v2571_v3, %v2331_v62 }
 0x2c5   : > { %v2645_v28 = vadd.f32 %v4226_v27, %v2609_v23 }
 0x2c6   : > { %v2018_v10 = vpop.f32.mrf.mxu2 }
 0x2c7   : > { %2677 = vst [vmem:[%s4236_s16 + $0xe8] sm:$0xff] %v2645_v28  ;;  %v2054_v47 = vadd.f32 %v2018_v10, %v1775_v13  ;;  %v2296_v48 = vpop.f32.mrf.mxu3  ;;  %v1742_v35 = vpop.f32.mrf.mxu1 }
 0x2c8   : > { %v1776_v59 = vadd.f32 %v1742_v35, %v4212_v2 }
 0x2c9   : > { %v2332_v16 = vadd.f32 %v2296_v48, %v2054_v47 }
 0x2ca   : > { %v2577_v40 = vpop.f32.mrf.mxu0 }
 0x2cb   : > { %v2610_v18 = vadd.f32 %v2574_v49, %v2332_v16 }
 0x2cd   : > { %v2646_v60 = vadd.f32 %v4226_v27, %v2610_v18 }
 0x2ce   : > { %v2021_v11 = vpop.f32.mrf.mxu2 }
 0x2cf   : > { %2678 = vst [vmem:[%s4236_s16 + $0xf0] sm:$0xff] %v2646_v60  ;;  %v2055_v37 = vadd.f32 %v2021_v11, %v1776_v59  ;;  %v2299_v57 = vpop.f32.mrf.mxu3 }
 0x2d1   : > { %v2333_v42 = vadd.f32 %v2299_v57, %v2055_v37 }
 0x2d3   : > { %v2611_v0 = vadd.f32 %v2577_v40, %v2333_v42 }
 0x2d5   : > { %v2647_v30 = vadd.f32 %v4226_v27, %v2611_v0 }
 0x2d7   : > { %2679 = vst [vmem:[%s4236_s16 + $0xf8] sm:$0xff] %v2647_v30 }
 0x2d8 PF: > { %s13_s12 = sadd.s32 1, %s3262_s12  }
 0x2d9   : > { %p10_p4 = scmp.ge.s32.totalorder %s13_s12, 4  }
 0x2db   :  { %12 = sbr.rel (!%p10_p4) target bundleno = 1 (0x1), region = 72 }

</bundles_post_ra>
